<compile_context>
chip_gen: v7x
topology: tpu7x:2x2x1
jax: 0.10.0
libtpu: 0.0.40
codegen_flags: <defaults>
</compile_context>

<pallas_src>
import jax
import jax.numpy as jnp
from jax.experimental import pallas as pl
from jax.experimental.pallas import tpu as pltpu


def mlp_kernel(x_ref, w1_ref, w2_ref, w3_ref, w5_ref, b_ref, o_ref):
    """Fused 4-layer MLP for one batch tile. Weights/biases live fully in VMEM."""
    cdt = w1_ref.dtype                      # matmul operand dtype (f32 or bf16)
    out_dim = o_ref.shape[-1]

    # Packed biases: row r holds layer r's bias in its leading lanes (f32).
    b1 = b_ref[0:1, 0:64]
    b2 = b_ref[1:2, 0:32]
    b3 = b_ref[2:3, 0:16]
    b5 = b_ref[3:4, 0:out_dim]

    x = x_ref[...]                          # already cast to cdt by the wrapper

    h = jnp.dot(x, w1_ref[...], preferred_element_type=jnp.float32) + b1
    h = jnp.maximum(h, 0.0)                 # f32 elementwise (v5e-friendly)

    h = jnp.dot(h.astype(cdt), w2_ref[...], preferred_element_type=jnp.float32) + b2
    h = jnp.maximum(h, 0.0)

    h = jnp.dot(h.astype(cdt), w3_ref[...], preferred_element_type=jnp.float32) + b3
    h = jnp.maximum(h, 0.0)

    h = jnp.dot(h.astype(cdt), w5_ref[...], preferred_element_type=jnp.float32) + b5

    o_ref[...] = h.astype(o_ref.dtype)


def mlp_forward(x, params, *, tile_m=512, compute_dtype=jnp.float32):
    """x: (B, input_dim) float32.  params: dict of (in,out) weights + (1,out) biases.

    Pads B up to a multiple of tile_m, runs a 1-D parallel grid over batch
    tiles, and slices the padding back off.  compute_dtype controls only the
    matmul operand dtype (accumulation/bias/ReLU stay f32).
    """
    B, in_dim = x.shape
    out_dim = params["w5"].shape[1]

    num_tiles = pl.cdiv(B, tile_m)
    Bp = num_tiles * tile_m
    if Bp != B:
        x = jnp.pad(x, ((0, Bp - B), (0, 0)))

    xc = x.astype(compute_dtype)
    w1 = params["w1"].astype(compute_dtype)
    w2 = params["w2"].astype(compute_dtype)
    w3 = params["w3"].astype(compute_dtype)
    w5 = params["w5"].astype(compute_dtype)

    # Pack the four biases into one small f32 ref (one BlockSpec instead of 4).
    bw = max(64, out_dim)
    bw = ((bw + 127) // 128) * 128
    bias_pack = jnp.zeros((4, bw), jnp.float32)
    bias_pack = bias_pack.at[0, :64].set(params["b1"].reshape(-1))
    bias_pack = bias_pack.at[1, :32].set(params["b2"].reshape(-1))
    bias_pack = bias_pack.at[2, :16].set(params["b3"].reshape(-1))
    bias_pack = bias_pack.at[3, :out_dim].set(params["b5"].reshape(-1))

    def full(shape):
        # full (untiled) block, identical for every grid step (DMA'd once)
        return pl.BlockSpec(shape, lambda i: (0, 0))

    out = pl.pallas_call(
        mlp_kernel,
        out_shape=jax.ShapeDtypeStruct((Bp, out_dim), jnp.float32),
        grid_spec=pltpu.PrefetchScalarGridSpec(
            num_scalar_prefetch=0,
            grid=(num_tiles,),
            in_specs=[
                pl.BlockSpec((tile_m, in_dim), lambda i: (i, 0)),   # x tile
                full(w1.shape), full(w2.shape), full(w3.shape), full(w5.shape),
                full(bias_pack.shape),
            ],
            out_specs=pl.BlockSpec((tile_m, out_dim), lambda i: (i, 0)),
        ),
        compiler_params=pltpu.CompilerParams(
            dimension_semantics=("parallel",)),   # shards batch tiles across v7x cores
    )(xc, w1, w2, w3, w5, bias_pack)

    return out[:B] if Bp != B else out


def mlp_apply(x, params, *, tile_m=512, compute_dtype=jnp.float32):
    """Dispatch: tiny batches are dominated by kernel launch + DMA setup, so
    let XLA fuse them; use the Pallas kernel once there is at least one full tile."""
    if x.shape[0] < tile_m:
        return mlp_reference(x, params)
    return mlp_forward(x, params, tile_m=tile_m, compute_dtype=compute_dtype)


def init_params(key, input_dim, output_dim):
    """Deterministic parameter init (uniform ~ PyTorch default fan_in scaling)."""
    dims = [(input_dim, 64), (64, 32), (32, 16), (16, output_dim)]
    names = ["1", "2", "3", "5"]
    params = {}
    for name, (fan_in, fan_out) in zip(names, dims):
        key, kw, kb = jax.random.split(key, 3)
        bound = 1.0 / jnp.sqrt(float(fan_in))
        # stored as (in, out) == PyTorch weight.T
        params[f"w{name}"] = jax.random.uniform(
            kw, (fan_in, fan_out), jnp.float32, -bound, bound)
        params[f"b{name}"] = jax.random.uniform(
            kb, (1, fan_out), jnp.float32, -bound, bound)
    return params


def mlp_reference(x, p):
    h = jnp.maximum(x @ p["w1"] + p["b1"], 0.0)
    h = jnp.maximum(h @ p["w2"] + p["b2"], 0.0)
    h = jnp.maximum(h @ p["w3"] + p["b3"], 0.0)
    return h @ p["w5"] + p["b5"]


if __name__ == "__main__":
    # dacon-ddarung regression: 9 input features (after dropping 'count'), 1 output
    INPUT_DIM, OUTPUT_DIM = 9, 1
    TILE_M = 512
    BATCH = 2 * TILE_M          # 2 grid steps -> both TensorCores on v7x

    key = jax.random.PRNGKey(0)
    key, kx = jax.random.split(key)
    x = jax.random.normal(kx, (BATCH, INPUT_DIM), jnp.float32)
    params = init_params(key, INPUT_DIM, OUTPUT_DIM)

    ref = mlp_reference(x, params)

    # 1) f32 path (bit-accurate vs reference)
    out_f32 = jax.block_until_ready(mlp_forward(x, params, tile_m=TILE_M))
    assert out_f32.shape == (BATCH, OUTPUT_DIM)
    assert jnp.allclose(out_f32, ref, atol=1e-5, rtol=1e-5), "f32 mismatch vs reference"

    # 2) bf16 matmul operands (halves x HBM traffic, native MXU path on v6e/v7x)
    out_bf16 = jax.block_until_ready(
        mlp_forward(x, params, tile_m=TILE_M, compute_dtype=jnp.bfloat16))
    assert jnp.allclose(out_bf16, ref, atol=3e-2, rtol=3e-2), "bf16 mismatch vs reference"

    # 3) ragged batch exercises the pad-and-slice path (no divisibility assert)
    B_RAGGED = BATCH - 100
    out_rag = jax.block_until_ready(mlp_forward(x[:B_RAGGED], params, tile_m=TILE_M))
    assert out_rag.shape == (B_RAGGED, OUTPUT_DIM)
    assert jnp.allclose(out_rag, ref[:B_RAGGED], atol=1e-5, rtol=1e-5), "ragged mismatch"

    print("KERNEL_OK")
</pallas_src>

<mosaic_0001>
module attributes {stable_mosaic.version = 11 : i64} {
  func.func @mlp_kernel(%arg0: i32, %arg1: memref<512x9xf32, #tpu.memory_space<vmem>>, %arg2: memref<9x64xf32, #tpu.memory_space<vmem>>, %arg3: memref<64x32xf32, #tpu.memory_space<vmem>>, %arg4: memref<32x16xf32, #tpu.memory_space<vmem>>, %arg5: memref<16x1xf32, #tpu.memory_space<vmem>>, %arg6: memref<4x128xf32, #tpu.memory_space<vmem>>, %arg7: memref<512x1xf32, #tpu.memory_space<vmem>>) attributes {dimension_semantics = [#tpu.dimension_semantics<parallel>], iteration_bounds = array<i64: 2>, scalar_prefetch = 0 : i64, scratch_operands = 0 : i64, tpu.core_type = #tpu.core_type<tc>, window_params = [{transform_indices = @transform_0, window_bounds = array<i64: 512, 9>}, {pipeline_mode = #tpu.pipeline_mode<synchronous>, transform_indices = @transform_1, window_bounds = array<i64: 9, 64>}, {pipeline_mode = #tpu.pipeline_mode<synchronous>, transform_indices = @transform_2, window_bounds = array<i64: 64, 32>}, {pipeline_mode = #tpu.pipeline_mode<synchronous>, transform_indices = @transform_3, window_bounds = array<i64: 32, 16>}, {pipeline_mode = #tpu.pipeline_mode<synchronous>, transform_indices = @transform_4, window_bounds = array<i64: 16, 1>}, {pipeline_mode = #tpu.pipeline_mode<synchronous>, transform_indices = @transform_5, window_bounds = array<i64: 4, 128>}, {transform_indices = @transform_6, window_bounds = array<i64: 512, 1>}]} {
    %c0 = arith.constant 0 : index
    %c0_0 = arith.constant 0 : index
    %0 = vector.load %arg6[%c0, %c0_0] : memref<4x128xf32, #tpu.memory_space<vmem>>, vector<1x64xf32>
    %c1 = arith.constant 1 : index
    %c0_1 = arith.constant 0 : index
    %1 = vector.load %arg6[%c1, %c0_1] : memref<4x128xf32, #tpu.memory_space<vmem>>, vector<1x32xf32>
    %c2 = arith.constant 2 : index
    %c0_2 = arith.constant 0 : index
    %2 = vector.load %arg6[%c2, %c0_2] : memref<4x128xf32, #tpu.memory_space<vmem>>, vector<1x16xf32>
    %c3 = arith.constant 3 : index
    %c0_3 = arith.constant 0 : index
    %3 = vector.load %arg6[%c3, %c0_3] : memref<4x128xf32, #tpu.memory_space<vmem>>, vector<1x1xf32>
    %c0_4 = arith.constant 0 : index
    %c0_5 = arith.constant 0 : index
    %4 = vector.load %arg1[%c0_4, %c0_5] : memref<512x9xf32, #tpu.memory_space<vmem>>, vector<512x9xf32>
    %c0_6 = arith.constant 0 : index
    %c0_7 = arith.constant 0 : index
    %5 = vector.load %arg2[%c0_6, %c0_7] : memref<9x64xf32, #tpu.memory_space<vmem>>, vector<9x64xf32>
    %cst = arith.constant dense<0.000000e+00> : vector<512x64xf32>
    %6 = tpu.matmul %4, %5, %cst {dimension_numbers = #tpu.dot_dimension_numbers<[1], [0], [0], [1], [0, 0, 1, 1], [], []>} : vector<512x9xf32>, vector<9x64xf32>, vector<512x64xf32> -> vector<512x64xf32>
    %7 = vector.broadcast %0 : vector<1x64xf32> to vector<512x64xf32>
    %8 = arith.addf %6, %7 : vector<512x64xf32>
    %cst_8 = arith.constant 0.000000e+00 : f32
    %9 = vector.broadcast %cst_8 : f32 to vector<512x64xf32>
    %10 = arith.maximumf %8, %9 : vector<512x64xf32>
    %c0_9 = arith.constant 0 : index
    %c0_10 = arith.constant 0 : index
    %11 = vector.load %arg3[%c0_9, %c0_10] : memref<64x32xf32, #tpu.memory_space<vmem>>, vector<64x32xf32>
    %cst_11 = arith.constant dense<0.000000e+00> : vector<512x32xf32>
    %12 = tpu.matmul %10, %11, %cst_11 {dimension_numbers = #tpu.dot_dimension_numbers<[1], [0], [0], [1], [0, 0, 1, 1], [], []>} : vector<512x64xf32>, vector<64x32xf32>, vector<512x32xf32> -> vector<512x32xf32>
    %13 = vector.broadcast %1 : vector<1x32xf32> to vector<512x32xf32>
    %14 = arith.addf %12, %13 : vector<512x32xf32>
    %cst_12 = arith.constant 0.000000e+00 : f32
    %15 = vector.broadcast %cst_12 : f32 to vector<512x32xf32>
    %16 = arith.maximumf %14, %15 : vector<512x32xf32>
    %c0_13 = arith.constant 0 : index
    %c0_14 = arith.constant 0 : index
    %17 = vector.load %arg4[%c0_13, %c0_14] : memref<32x16xf32, #tpu.memory_space<vmem>>, vector<32x16xf32>
    %cst_15 = arith.constant dense<0.000000e+00> : vector<512x16xf32>
    %18 = tpu.matmul %16, %17, %cst_15 {dimension_numbers = #tpu.dot_dimension_numbers<[1], [0], [0], [1], [0, 0, 1, 1], [], []>} : vector<512x32xf32>, vector<32x16xf32>, vector<512x16xf32> -> vector<512x16xf32>
    %19 = vector.broadcast %2 : vector<1x16xf32> to vector<512x16xf32>
    %20 = arith.addf %18, %19 : vector<512x16xf32>
    %cst_16 = arith.constant 0.000000e+00 : f32
    %21 = vector.broadcast %cst_16 : f32 to vector<512x16xf32>
    %22 = arith.maximumf %20, %21 : vector<512x16xf32>
    %c0_17 = arith.constant 0 : index
    %c0_18 = arith.constant 0 : index
    %23 = vector.load %arg5[%c0_17, %c0_18] : memref<16x1xf32, #tpu.memory_space<vmem>>, vector<16x1xf32>
    %cst_19 = arith.constant dense<0.000000e+00> : vector<512x1xf32>
    %24 = tpu.matmul %22, %23, %cst_19 {dimension_numbers = #tpu.dot_dimension_numbers<[1], [0], [0], [1], [0, 0, 1, 1], [], []>} : vector<512x16xf32>, vector<16x1xf32>, vector<512x1xf32> -> vector<512x1xf32>
    %25 = vector.broadcast %3 : vector<1x1xf32> to vector<512x1xf32>
    %26 = arith.addf %24, %25 : vector<512x1xf32>
    %c0_20 = arith.constant 0 : index
    %c0_21 = arith.constant 0 : index
    %27 = vector.load %arg7[%c0_20, %c0_21] : memref<512x1xf32, #tpu.memory_space<vmem>>, vector<512x1xf32>
    tpu.vector_store %arg7[%c0_20, %c0_21], %26 {strides = array<i32>} : memref<512x1xf32, #tpu.memory_space<vmem>>, vector<512x1xf32>,
    return
  }
  func.func @transform_0(%arg0: i32) -> (i32, i32) {
    %c0_i32 = arith.constant 0 : i32
    %c0_i32_0 = arith.constant 0 : i32
    return %arg0, %c0_i32 : i32, i32
  }
  func.func @transform_1(%arg0: i32) -> (i32, i32) {
    %c0_i32 = arith.constant 0 : i32
    %c0_i32_0 = arith.constant 0 : i32
    %c0_i32_1 = arith.constant 0 : i32
    return %c0_i32, %c0_i32_0 : i32, i32
  }
  func.func @transform_2(%arg0: i32) -> (i32, i32) {
    %c0_i32 = arith.constant 0 : i32
    %c0_i32_0 = arith.constant 0 : i32
    %c0_i32_1 = arith.constant 0 : i32
    return %c0_i32, %c0_i32_0 : i32, i32
  }
  func.func @transform_3(%arg0: i32) -> (i32, i32) {
    %c0_i32 = arith.constant 0 : i32
    %c0_i32_0 = arith.constant 0 : i32
    %c0_i32_1 = arith.constant 0 : i32
    return %c0_i32, %c0_i32_0 : i32, i32
  }
  func.func @transform_4(%arg0: i32) -> (i32, i32) {
    %c0_i32 = arith.constant 0 : i32
    %c0_i32_0 = arith.constant 0 : i32
    %c0_i32_1 = arith.constant 0 : i32
    return %c0_i32, %c0_i32_0 : i32, i32
  }
  func.func @transform_5(%arg0: i32) -> (i32, i32) {
    %c0_i32 = arith.constant 0 : i32
    %c0_i32_0 = arith.constant 0 : i32
    %c0_i32_1 = arith.constant 0 : i32
    return %c0_i32, %c0_i32_0 : i32, i32
  }
  func.func @transform_6(%arg0: i32) -> (i32, i32) {
    %c0_i32 = arith.constant 0 : i32
    %c0_i32_0 = arith.constant 0 : i32
    return %arg0, %c0_i32 : i32, i32
  }
}

</mosaic_0001>

<bundles_post_ra>
// kernel: tpu_custom_call.1
= control target key start
LH: loop header
LB: loop body
LE: loop exit
PB: predicated region body
PF: predicated region fallthrough
CT: control target
= control target key end

     0   :  { %s4033_s21 = smov 0   ;;  %s4833_s0 = inlined_call_operand.vmem [shape: f32[1024,9], index: 0, kind: input, shape index: {}]   ;;  %s4834_s1 = inlined_call_operand.vmem [shape: f32[9,64], index: 1, kind: input, shape index: {}]   ;;  %s4835_s2 = inlined_call_operand.vmem [shape: f32[64,32], index: 2, kind: input, shape index: {}]   ;;  %s4836_s3 = inlined_call_operand.vmem [shape: f32[32,16], index: 3, kind: input, shape index: {}]   ;;  %s4837_s4 = inlined_call_operand.vmem [shape: f32[16,1], index: 4, kind: input, shape index: {}]   ;;  %s4838_s5 = inlined_call_operand.vmem [shape: f32[4,128], index: 5, kind: input, shape index: {}]   ;;  %s4839_s6 = inlined_call_operand.vmem [shape: f32[1024,1], index: 6, kind: output, shape index: {}]  }
   0x1 LB: > { %s2984_s22 = sadd.s32 4294967295, %s3995_s21   ;;  %p2988_p0 = scmp.ge.s32.totalorder %s3995_s21, 1  ;;  %s3995_s21 = sphi %s4033_s21, %s16_s21  }
   0x2   : > { %p213_p1 = scmp.lt.s32.totalorder %s3995_s21, 3 }
   0x4   : > { %p214_p2 = pnand %p2988_p0, %p213_p1 }
   0x5   : > { %v323_v0 = vld [vmem:[%s4834_s1] sm:$0xff] (!%p214_p2)  ;;  %v324_v1 = vld [vmem:[%s4834_s1 + $0x8] sm:$0x1] (!%p214_p2)  ;;  %vm522_vm0 = vcmask (!%p214_p2), 1040384   ;;  %s2989_s27 = sshll.u32 (!%p214_p2), %s2984_s22, 6  ;;  %vm3997_vm1 = vmmov (!%p214_p2), 1  }
   0x6   : > { %217 = sbr.rel (%p214_p2) target bundleno = 1012 (0x3f4), region = 44  ;;  %v3944_v2 = vpack.c.bf16 (!%p214_p2), %v324_v1, %v323_v0  ;;  %vm3945_vm2 = vmpackc.low (!%p214_p2), %vm522_vm0, %vm3997_vm1  ;;  %p244_p3 = scmp.lt.s32.totalorder (!%p214_p2), %s2989_s27, 127  ;;  %vm329_vm3 = vcmask (!%p214_p2), 72704   ;;  %v975_v3 = vld [vmem:[%s4835_s2] sm:$0xff] (!%p214_p2)  ;;  %v976_v4 = vld [vmem:[%s4835_s2 + $0x8] sm:$0xff] (!%p214_p2)  ;;  %vm987_vm4 = vcmask (!%p214_p2), 523264  }
   0x7   : > { %v977_v5 = vld [vmem:[%s4835_s2 + $0x10] sm:$0xff] (!%p214_p2)  ;;  %v3950_v6 = vpack.c.bf16 (!%p214_p2), %v976_v4, %v975_v3  ;;  %v978_v7 = vld [vmem:[%s4835_s2 + $0x18] sm:$0xff] (!%p214_p2)  ;;  %v979_v8 = vld [vmem:[%s4835_s2 + $0x20] sm:$0xff] (!%p214_p2)  ;;  %vm1637_vm5 = vcmask (!%p214_p2), 261120   ;;  %vm2285_vm6 = vcmask (!%p214_p2), 130048   ;;  %vm2863_vm7 = vcmask (!%p214_p2), 7168  }
   0x8   : > { %3946 = vmatprep.subr.msk.bf16.mxu0 (!%p214_p2), %vm3945_vm2, %v3944_v2  ;;  %v980_v9 = vld [vmem:[%s4835_s2 + $0x28] sm:$0xff] (!%p214_p2)  ;;  %v3954_v13 = vpack.c.bf16 (!%p214_p2), %v978_v7, %v977_v5  ;;  %v981_v57 = vld [vmem:[%s4835_s2 + $0x30] sm:$0xff] (!%p214_p2)  ;;  %v982_v58 = vld [vmem:[%s4835_s2 + $0x38] sm:$0xff] (!%p214_p2) }
   0x9   : > { %3949 = vmatpush3.bf16.msk.msra.mxu0 (!%p214_p2), %vm3945_vm2, %v3944_v2  ;;  %3951 = vmatprep.subr.bf16.mxu1 (!%p214_p2), %v3950_v6  ;;  %v3958_v15 = vpack.c.bf16 (!%p214_p2), %v980_v9, %v979_v8  ;;  %v3962_v59 = vpack.c.bf16 (!%p214_p2), %v982_v58, %v981_v57 }
   0xa   : > { %3953 = vmatpush3.bf16.msra.mxu1 (!%p214_p2), %v3950_v6 }
   0xb   : > { %3955 = vmatprep.subr.bf16.mxu1 (!%p214_p2), %v3954_v13 }
   0xd   : > { %s4841_s27 = smov (!%p244_p3, %s2989_s27), 127 }
   0xe   : > { %s2990_s28 = sshll.u32 %s4841_s27, 3  ;;  %3957 = vmatpush3.bf16.msra.mxu1 %v3954_v13 }
   0xf   : > { %s4064_s13 = scalar_lea.vmem %s4833_s0, %s2990_s28  ;;  %3959 = vmatprep.subr.bf16.mxu1 %v3958_v15  ;;  %s4636_s26 = scalar_lea.vmem %s4839_s6, %s2990_s28 }
  0x10   : > { %v259_v10 = vld [vmem:[%s4064_s13] sm:$0xff]  ;;  %v260_v11 = vld [vmem:[%s4064_s13 + $0x8] sm:$0xff]  ;;  %v261_v12 = vld [vmem:[%s4064_s13 + $0x10] sm:$0xff] }
  0x11   : > { %3532 = vmatprep.mubr.msk.f32.mxu0 %vm329_vm3, %v259_v10  ;;  %v262_v14 = vld [vmem:[%s4064_s13 + $0x18] sm:$0xff]  ;;  %v263_v16 = vld [vmem:[%s4064_s13 + $0x20] sm:$0xff]  ;;  %v264_v17 = vld [vmem:[%s4064_s13 + $0x28] sm:$0xff] }
  0x12   : > { %3533 = vmatmul.mubr.msk.f32.vlgmr.msra.gmra.mrb[0].mxu0 %vm329_vm3, %v260_v11  ;;  %v265_v18 = vld [vmem:[%s4064_s13 + $0x30] sm:$0xff]  ;;  %3961 = vmatpush3.bf16.msra.mxu1 %v3958_v15  ;;  %v266_v19 = vld [vmem:[%s4064_s13 + $0x38] sm:$0xff]  ;;  %v267_v20 = vld [vmem:[%s4064_s13 + $0x40] sm:$0xff] }
  0x13   : > { %3535 = vmatprep.mubr.msk.f32.mxu0 %vm329_vm3, %v261_v12  ;;  %v268_v21 = vld [vmem:[%s4064_s13 + $0x48] sm:$0xff]  ;;  %v269_v22 = vld [vmem:[%s4064_s13 + $0x50] sm:$0xff]  ;;  %v270_v23 = vld [vmem:[%s4064_s13 + $0x58] sm:$0xff]  ;;  %3963 = vmatprep.subr.bf16.mxu1 %v3962_v59 }
  0x14   : > { %v271_v24 = vld [vmem:[%s4064_s13 + $0x60] sm:$0xff]  ;;  %v272_v25 = vld [vmem:[%s4064_s13 + $0x68] sm:$0xff]  ;;  %v273_v26 = vld [vmem:[%s4064_s13 + $0x70] sm:$0xff] }
  0x15   : > { %v274_v27 = vld [vmem:[%s4064_s13 + $0x78] sm:$0xff]  ;;  %v275_v28 = vld [vmem:[%s4064_s13 + $0x80] sm:$0xff]  ;;  %v276_v29 = vld [vmem:[%s4064_s13 + $0x88] sm:$0xff] }
  0x16   : > { %3536 = vmatmul.mubr.msk.f32.gmra.mrb[2].mxu0 %vm329_vm3, %v262_v14  ;;  %v277_v30 = vld [vmem:[%s4064_s13 + $0x90] sm:$0xff]  ;;  %v278_v31 = vld [vmem:[%s4064_s13 + $0x98] sm:$0xff]  ;;  %v279_v32 = vld [vmem:[%s4064_s13 + $0xa0] sm:$0xff]  ;;  %3965 = vmatpush3.bf16.msra.mxu1 %v3962_v59 }
  0x17   : > { %3538 = vmatprep.mubr.msk.f32.mxu0 %vm329_vm3, %v263_v16  ;;  %v280_v33 = vld [vmem:[%s4064_s13 + $0xa8] sm:$0xff]  ;;  %v281_v34 = vld [vmem:[%s4064_s13 + $0xb0] sm:$0xff]  ;;  %v282_v35 = vld [vmem:[%s4064_s13 + $0xb8] sm:$0xff] }
  0x18   : > { %v283_v36 = vld [vmem:[%s4064_s13 + $0xc0] sm:$0xff]  ;;  %v284_v37 = vld [vmem:[%s4064_s13 + $0xc8] sm:$0xff]  ;;  %v285_v38 = vld [vmem:[%s4064_s13 + $0xd0] sm:$0xff] }
  0x19   : > { %v286_v39 = vld [vmem:[%s4064_s13 + $0xd8] sm:$0xff]  ;;  %v287_v40 = vld [vmem:[%s4064_s13 + $0xe0] sm:$0xff]  ;;  %v288_v41 = vld [vmem:[%s4064_s13 + $0xe8] sm:$0xff] }
  0x1a   : > { %3539 = vmatmul.mubr.msk.f32.gmra.mrb[4].mxu0 %vm329_vm3, %v264_v17  ;;  %v289_v42 = vld [vmem:[%s4064_s13 + $0xf0] sm:$0xff]  ;;  %v290_v43 = vld [vmem:[%s4064_s13 + $0xf8] sm:$0xff]  ;;  %v291_v44 = vld [vmem:[%s4064_s13 + $0x100] sm:$0xff] }
  0x1b   : > { %3541 = vmatprep.mubr.msk.f32.mxu0 %vm329_vm3, %v265_v18  ;;  %v292_v45 = vld [vmem:[%s4064_s13 + $0x108] sm:$0xff]  ;;  %v293_v46 = vld [vmem:[%s4064_s13 + $0x110] sm:$0xff]  ;;  %v294_v47 = vld [vmem:[%s4064_s13 + $0x118] sm:$0xff] }
  0x1c   : > { %v295_v48 = vld [vmem:[%s4064_s13 + $0x120] sm:$0xff]  ;;  %v296_v49 = vld [vmem:[%s4064_s13 + $0x128] sm:$0xff]  ;;  %v297_v50 = vld [vmem:[%s4064_s13 + $0x130] sm:$0xff] }
  0x1d   : > { %v298_v51 = vld [vmem:[%s4064_s13 + $0x138] sm:$0xff]  ;;  %v299_v52 = vld [vmem:[%s4064_s13 + $0x140] sm:$0xff]  ;;  %v300_v53 = vld [vmem:[%s4064_s13 + $0x148] sm:$0xff] }
  0x1e   : > { %3542 = vmatmul.mubr.msk.f32.gmra.mrb[6].mxu0 %vm329_vm3, %v266_v19  ;;  %v301_v54 = vld [vmem:[%s4064_s13 + $0x150] sm:$0xff]  ;;  %v302_v55 = vld [vmem:[%s4064_s13 + $0x158] sm:$0xff]  ;;  %v303_v56 = vld [vmem:[%s4064_s13 + $0x160] sm:$0xff] }
  0x1f   : > { %3544 = vmatprep.mubr.msk.f32.mxu0 %vm329_vm3, %v267_v20  ;;  %v304_v60 = vld [vmem:[%s4064_s13 + $0x168] sm:$0xff]  ;;  %v305_v61 = vld [vmem:[%s4064_s13 + $0x170] sm:$0xff]  ;;  %v306_v62 = vld [vmem:[%s4064_s13 + $0x178] sm:$0xff] }
  0x20   : > { %v307_v63 = vld [vmem:[%s4064_s13 + $0x180] sm:$0xff]  ;;  %v308_v0 = vld [vmem:[%s4064_s13 + $0x188] sm:$0xff]  ;;  %v309_v1 = vld [vmem:[%s4064_s13 + $0x190] sm:$0xff] }
  0x21   : > { %v310_v2 = vld [vmem:[%s4064_s13 + $0x198] sm:$0xff]  ;;  %v311_v3 = vld [vmem:[%s4064_s13 + $0x1a0] sm:$0xff]  ;;  %v312_v4 = vld [vmem:[%s4064_s13 + $0x1a8] sm:$0xff] }
  0x22   : > { %3545 = vmatmul.mubr.msk.f32.gmra.mrb[8].mxu0 %vm329_vm3, %v268_v21  ;;  %v313_v5 = vld [vmem:[%s4064_s13 + $0x1b0] sm:$0xff]  ;;  %v314_v6 = vld [vmem:[%s4064_s13 + $0x1b8] sm:$0xff]  ;;  %v315_v7 = vld [vmem:[%s4064_s13 + $0x1c0] sm:$0xff] }
  0x23   : > { %3547 = vmatprep.mubr.msk.f32.mxu0 %vm329_vm3, %v269_v22  ;;  %v316_v8 = vld [vmem:[%s4064_s13 + $0x1c8] sm:$0xff]  ;;  %v317_v9 = vld [vmem:[%s4064_s13 + $0x1d0] sm:$0xff]  ;;  %v318_v10 = vld [vmem:[%s4064_s13 + $0x1d8] sm:$0xff] }
  0x24   : > { %v319_v11 = vld [vmem:[%s4064_s13 + $0x1e0] sm:$0xff]  ;;  %v320_v12 = vld [vmem:[%s4064_s13 + $0x1e8] sm:$0xff]  ;;  %v321_v13 = vld [vmem:[%s4064_s13 + $0x1f0] sm:$0xff] }
  0x25   : > { %v322_v14 = vld [vmem:[%s4064_s13 + $0x1f8] sm:$0xff]  ;;  %v1629_v15 = vld [vmem:[%s4836_s3] sm:$0xff]  ;;  %v1630_v16 = vld [vmem:[%s4836_s3 + $0x8] sm:$0xff] }
  0x26   : > { %3548 = vmatmul.mubr.msk.f32.gmra.mrb[10].mxu0 %vm329_vm3, %v270_v23  ;;  %v3966_v17 = vpack.c.bf16 %v1630_v16, %v1629_v15  ;;  %v4218_v18 = vld [vmem:[%s4838_s5] ss:$0 sm:$0xff]  ;;  %v1631_v23 = vld [vmem:[%s4836_s3 + $0x10] sm:$0xff] }
  0x27   : > { %3550 = vmatprep.mubr.msk.f32.mxu0 %vm329_vm3, %v271_v24  ;;  %v1632_v24 = vld [vmem:[%s4836_s3 + $0x18] sm:$0xff] }
  0x28   : > { %3967 = vmatprep.subr.bf16.mxu0 %v3966_v17 }
  0x29   : > { %3969 = vmatpush3.bf16.msra.mxu0 %v3966_v17 }
  0x2a   : > { %3551 = vmatmul.mubr.msk.f32.gmra.mrb[12].mxu0 %vm329_vm3, %v272_v25 }
  0x2b   : > { %3553 = vmatprep.mubr.msk.f32.mxu0 %vm329_vm3, %v273_v26 }
  0x2e   : > { %3554 = vmatmul.mubr.msk.f32.gmra.mrb[14].mxu0 %vm329_vm3, %v274_v27  ;;  %v3970_v27 = vpack.c.bf16 %v1632_v24, %v1631_v23 }
  0x2f   : > { %3556 = vmatprep.mubr.msk.f32.mxu0 %vm329_vm3, %v275_v28 }
  0x30   : > { %3971 = vmatprep.subr.bf16.mxu0 %v3970_v27 }
  0x31   : > { %3973 = vmatpush3.bf16.msra.mxu0 %v3970_v27 }
  0x32   : > { %3557 = vmatmul.mubr.msk.f32.gmra.mrb[16].mxu0 %vm329_vm3, %v276_v29 }
  0x33   : > { %3559 = vmatprep.mubr.msk.f32.mxu0 %vm329_vm3, %v277_v30 }
  0x36   : > { %3560 = vmatmul.mubr.msk.f32.gmra.mrb[18].mxu0 %vm329_vm3, %v278_v31 }
  0x37   : > { %3562 = vmatprep.mubr.msk.f32.mxu0 %vm329_vm3, %v279_v32 }
  0x3a   : > { %3563 = vmatmul.mubr.msk.f32.gmra.mrb[20].mxu0 %vm329_vm3, %v280_v33 }
  0x3b   : > { %3565 = vmatprep.mubr.msk.f32.mxu0 %vm329_vm3, %v281_v34 }
  0x3e   : > { %3566 = vmatmul.mubr.msk.f32.gmra.mrb[22].mxu0 %vm329_vm3, %v282_v35 }
  0x3f   : > { %3568 = vmatprep.mubr.msk.f32.mxu0 %vm329_vm3, %v283_v36 }
  0x42   : > { %3569 = vmatmul.mubr.msk.f32.gmra.mrb[24].mxu0 %vm329_vm3, %v284_v37 }
  0x43   : > { %3571 = vmatprep.mubr.msk.f32.mxu0 %vm329_vm3, %v285_v38 }
  0x46   : > { %3572 = vmatmul.mubr.msk.f32.gmra.mrb[26].mxu0 %vm329_vm3, %v286_v39 }
  0x47   : > { %3574 = vmatprep.mubr.msk.f32.mxu0 %vm329_vm3, %v287_v40 }
  0x4a   : > { %3575 = vmatmul.mubr.msk.f32.gmra.mrb[28].mxu0 %vm329_vm3, %v288_v41 }
  0x4b   : > { %3577 = vmatprep.mubr.msk.f32.mxu0 %vm329_vm3, %v289_v42 }
  0x4e   : > { %3578 = vmatmul.mubr.msk.f32.gmra.mrb[30].mxu0 %vm329_vm3, %v290_v43 }
  0x4f   : > { %3580 = vmatprep.mubr.msk.f32.mxu0 %vm329_vm3, %v291_v44 }
  0x52   : > { %3581 = vmatmul.mubr.msk.f32.gmra.mrb[32].mxu0 %vm329_vm3, %v292_v45 }
  0x53   : > { %3583 = vmatprep.mubr.msk.f32.mxu0 %vm329_vm3, %v293_v46 }
  0x56   : > { %3584 = vmatmul.mubr.msk.f32.gmra.mrb[34].mxu0 %vm329_vm3, %v294_v47 }
  0x57   : > { %3586 = vmatprep.mubr.msk.f32.mxu0 %vm329_vm3, %v295_v48 }
  0x5a   : > { %3587 = vmatmul.mubr.msk.f32.gmra.mrb[36].mxu0 %vm329_vm3, %v296_v49 }
  0x5b   : > { %3589 = vmatprep.mubr.msk.f32.mxu0 %vm329_vm3, %v297_v50 }
  0x5e   : > { %3590 = vmatmul.mubr.msk.f32.gmra.mrb[38].mxu0 %vm329_vm3, %v298_v51 }
  0x5f   : > { %3592 = vmatprep.mubr.msk.f32.mxu0 %vm329_vm3, %v299_v52 }
  0x62   : > { %3593 = vmatmul.mubr.msk.f32.gmra.mrb[40].mxu0 %vm329_vm3, %v300_v53 }
  0x63   : > { %3595 = vmatprep.mubr.msk.f32.mxu0 %vm329_vm3, %v301_v54 }
  0x66   : > { %3596 = vmatmul.mubr.msk.f32.gmra.mrb[42].mxu0 %vm329_vm3, %v302_v55 }
  0x67   : > { %3598 = vmatprep.mubr.msk.f32.mxu0 %vm329_vm3, %v303_v56 }
  0x6a   : > { %3599 = vmatmul.mubr.msk.f32.gmra.mrb[44].mxu0 %vm329_vm3, %v304_v60 }
  0x6b   : > { %3601 = vmatprep.mubr.msk.f32.mxu0 %vm329_vm3, %v305_v61 }
  0x6e   : > { %3602 = vmatmul.mubr.msk.f32.gmra.mrb[46].mxu0 %vm329_vm3, %v306_v62 }
  0x6f   : > { %3604 = vmatprep.mubr.msk.f32.mxu0 %vm329_vm3, %v307_v63 }
  0x72   : > { %3605 = vmatmul.mubr.msk.f32.gmra.mrb[48].mxu0 %vm329_vm3, %v308_v0 }
  0x73   : > { %3607 = vmatprep.mubr.msk.f32.mxu0 %vm329_vm3, %v309_v1 }
  0x76   : > { %3608 = vmatmul.mubr.msk.f32.gmra.mrb[50].mxu0 %vm329_vm3, %v310_v2 }
  0x77   : > { %3610 = vmatprep.mubr.msk.f32.mxu0 %vm329_vm3, %v311_v3 }
  0x7a   : > { %3611 = vmatmul.mubr.msk.f32.gmra.mrb[52].mxu0 %vm329_vm3, %v312_v4 }
  0x7b   : > { %3613 = vmatprep.mubr.msk.f32.mxu0 %vm329_vm3, %v313_v5 }
  0x7e   : > { %3614 = vmatmul.mubr.msk.f32.gmra.mrb[54].mxu0 %vm329_vm3, %v314_v6 }
  0x7f   : > { %3616 = vmatprep.mubr.msk.f32.mxu0 %vm329_vm3, %v315_v7 }
  0x82   : > { %3617 = vmatmul.mubr.msk.f32.gmra.mrb[56].mxu0 %vm329_vm3, %v316_v8 }
  0x83   : > { %3619 = vmatprep.mubr.msk.f32.mxu0 %vm329_vm3, %v317_v9 }
  0x86   : > { %3620 = vmatmul.mubr.msk.f32.gmra.mrb[58].mxu0 %vm329_vm3, %v318_v10 }
  0x87   : > { %3622 = vmatprep.mubr.msk.f32.mxu0 %vm329_vm3, %v319_v11 }
  0x8a   : > { %3623 = vmatmul.mubr.msk.f32.gmra.mrb[60].mxu0 %vm329_vm3, %v320_v12 }
  0x8b   : > { %3625 = vmatprep.mubr.msk.f32.mxu0 %vm329_vm3, %v321_v13 }
  0x8e   : > { %3626 = vmatmul.mubr.msk.f32.gmra.mrb[62].mxu0 %vm329_vm3, %v322_v14 }
  0xe5   : > { %v3534_v19 = vpop.f32.mrb[0].mxu0 }
  0xe6   : > { %v598_v20 = vadd.f32 %v3534_v19, %v4218_v18  ;;  %v592_v21 = vpop.f32.mrb[1].mxu0 }
  0xe7   : > { %v593_v22 = vadd.f32 %v4218_v18, %v592_v21 }
  0xe8   : > { %v912_v28 = vmax.f32 %v598_v20, 0.0 }
  0xe9   : > { %v911_v25 = vmax.f32 %v593_v22, 0.0  ;;  %v3537_v26 = vpop.f32.mrb[2].mxu0 }
  0xea   : > { %v608_v29 = vadd.f32 %v3537_v26, %v4218_v18  ;;  %v602_v30 = vpop.f32.mrb[3].mxu0 }
  0xeb   : > { %v603_v31 = vadd.f32 %v4218_v18, %v602_v30  ;;  %3644 = vmatprep.mubr.msk.f32.mxu1 %vm987_vm4, %v911_v25 }
  0xec   : > { %3645 = vmatmul.mubr.msk.f32.vlgmr.msra.gmra.mrb[0].mxu1 %vm987_vm4, %v912_v28  ;;  %v914_v34 = vmax.f32 %v608_v29, 0.0 }
  0xed   : > { %v913_v32 = vmax.f32 %v603_v31, 0.0  ;;  %v3540_v33 = vpop.f32.mrb[4].mxu0 }
  0xee   : > { %v618_v35 = vadd.f32 %v3540_v33, %v4218_v18  ;;  %v612_v36 = vpop.f32.mrb[5].mxu0 }
  0xef   : > { %v613_v37 = vadd.f32 %v4218_v18, %v612_v36  ;;  %3647 = vmatprep.mubr.msk.f32.mxu1 %vm987_vm4, %v913_v32 }
  0xf0   : > { %3648 = vmatmul.mubr.msk.f32.gmra.mrb[2].mxu1 %vm987_vm4, %v914_v34  ;;  %v916_v40 = vmax.f32 %v618_v35, 0.0 }
  0xf1   : > { %v915_v38 = vmax.f32 %v613_v37, 0.0  ;;  %v3543_v39 = vpop.f32.mrb[6].mxu0 }
  0xf2   : > { %v628_v41 = vadd.f32 %v3543_v39, %v4218_v18  ;;  %v622_v42 = vpop.f32.mrb[7].mxu0 }
  0xf3   : > { %v623_v43 = vadd.f32 %v4218_v18, %v622_v42  ;;  %3650 = vmatprep.mubr.msk.f32.mxu1 %vm987_vm4, %v915_v38 }
  0xf4   : > { %3651 = vmatmul.mubr.msk.f32.gmra.mrb[4].mxu1 %vm987_vm4, %v916_v40  ;;  %v918_v46 = vmax.f32 %v628_v41, 0.0 }
  0xf5   : > { %v917_v44 = vmax.f32 %v623_v43, 0.0  ;;  %v3546_v45 = vpop.f32.mrb[8].mxu0 }
  0xf6   : > { %v638_v47 = vadd.f32 %v3546_v45, %v4218_v18  ;;  %v632_v48 = vpop.f32.mrb[9].mxu0 }
  0xf7   : > { %v633_v49 = vadd.f32 %v4218_v18, %v632_v48  ;;  %3653 = vmatprep.mubr.msk.f32.mxu1 %vm987_vm4, %v917_v44 }
  0xf8   : > { %3654 = vmatmul.mubr.msk.f32.gmra.mrb[6].mxu1 %vm987_vm4, %v918_v46  ;;  %v920_v52 = vmax.f32 %v638_v47, 0.0 }
  0xf9   : > { %v919_v50 = vmax.f32 %v633_v49, 0.0  ;;  %v3549_v51 = vpop.f32.mrb[10].mxu0 }
  0xfa   : > { %v648_v53 = vadd.f32 %v3549_v51, %v4218_v18  ;;  %v642_v54 = vpop.f32.mrb[11].mxu0 }
  0xfb   : > { %v643_v55 = vadd.f32 %v4218_v18, %v642_v54  ;;  %3656 = vmatprep.mubr.msk.f32.mxu1 %vm987_vm4, %v919_v50 }
  0xfc   : > { %3657 = vmatmul.mubr.msk.f32.gmra.mrb[8].mxu1 %vm987_vm4, %v920_v52  ;;  %v922_v58 = vmax.f32 %v648_v53, 0.0 }
  0xfd   : > { %v921_v56 = vmax.f32 %v643_v55, 0.0  ;;  %v3552_v57 = vpop.f32.mrb[12].mxu0 }
  0xfe   : > { %v658_v59 = vadd.f32 %v3552_v57, %v4218_v18  ;;  %v652_v60 = vpop.f32.mrb[13].mxu0 }
  0xff   : > { %v653_v61 = vadd.f32 %v4218_v18, %v652_v60  ;;  %3659 = vmatprep.mubr.msk.f32.mxu1 %vm987_vm4, %v921_v56 }
 0x100   : > { %3660 = vmatmul.mubr.msk.f32.gmra.mrb[10].mxu1 %vm987_vm4, %v922_v58  ;;  %v924_v0 = vmax.f32 %v658_v59, 0.0 }
 0x101   : > { %v923_v62 = vmax.f32 %v653_v61, 0.0  ;;  %v3555_v63 = vpop.f32.mrb[14].mxu0 }
 0x102   : > { %v668_v1 = vadd.f32 %v3555_v63, %v4218_v18  ;;  %v662_v2 = vpop.f32.mrb[15].mxu0 }
 0x103   : > { %v663_v3 = vadd.f32 %v4218_v18, %v662_v2  ;;  %3662 = vmatprep.mubr.msk.f32.mxu1 %vm987_vm4, %v923_v62 }
 0x104   : > { %3663 = vmatmul.mubr.msk.f32.gmra.mrb[12].mxu1 %vm987_vm4, %v924_v0  ;;  %v926_v6 = vmax.f32 %v668_v1, 0.0 }
 0x105   : > { %v925_v4 = vmax.f32 %v663_v3, 0.0  ;;  %v3558_v5 = vpop.f32.mrb[16].mxu0 }
 0x106   : > { %v678_v7 = vadd.f32 %v3558_v5, %v4218_v18  ;;  %v672_v8 = vpop.f32.mrb[17].mxu0 }
 0x107   : > { %v673_v9 = vadd.f32 %v4218_v18, %v672_v8  ;;  %3665 = vmatprep.mubr.msk.f32.mxu1 %vm987_vm4, %v925_v4 }
 0x108   : > { %3666 = vmatmul.mubr.msk.f32.gmra.mrb[14].mxu1 %vm987_vm4, %v926_v6  ;;  %v928_v12 = vmax.f32 %v678_v7, 0.0 }
 0x109   : > { %v927_v10 = vmax.f32 %v673_v9, 0.0  ;;  %v3561_v11 = vpop.f32.mrb[18].mxu0 }
 0x10a   : > { %v688_v13 = vadd.f32 %v3561_v11, %v4218_v18  ;;  %v682_v14 = vpop.f32.mrb[19].mxu0 }
 0x10b   : > { %v683_v15 = vadd.f32 %v4218_v18, %v682_v14  ;;  %3668 = vmatprep.mubr.msk.f32.mxu1 %vm987_vm4, %v927_v10 }
 0x10c   : > { %3669 = vmatmul.mubr.msk.f32.gmra.mrb[16].mxu1 %vm987_vm4, %v928_v12  ;;  %v930_v19 = vmax.f32 %v688_v13, 0.0 }
 0x10d   : > { %v929_v16 = vmax.f32 %v683_v15, 0.0  ;;  %v3564_v17 = vpop.f32.mrb[20].mxu0 }
 0x10e   : > { %v698_v20 = vadd.f32 %v3564_v17, %v4218_v18  ;;  %v692_v21 = vpop.f32.mrb[21].mxu0 }
 0x10f   : > { %v693_v22 = vadd.f32 %v4218_v18, %v692_v21  ;;  %3671 = vmatprep.mubr.msk.f32.mxu1 %vm987_vm4, %v929_v16 }
 0x110   : > { %3672 = vmatmul.mubr.msk.f32.gmra.mrb[18].mxu1 %vm987_vm4, %v930_v19  ;;  %v932_v25 = vmax.f32 %v698_v20, 0.0 }
 0x111   : > { %v931_v23 = vmax.f32 %v693_v22, 0.0  ;;  %v3567_v24 = vpop.f32.mrb[22].mxu0 }
 0x112   : > { %v708_v26 = vadd.f32 %v3567_v24, %v4218_v18  ;;  %v702_v27 = vpop.f32.mrb[23].mxu0 }
 0x113   : > { %v703_v28 = vadd.f32 %v4218_v18, %v702_v27  ;;  %3674 = vmatprep.mubr.msk.f32.mxu1 %vm987_vm4, %v931_v23 }
 0x114   : > { %3675 = vmatmul.mubr.msk.f32.gmra.mrb[20].mxu1 %vm987_vm4, %v932_v25  ;;  %v934_v31 = vmax.f32 %v708_v26, 0.0 }
 0x115   : > { %v933_v29 = vmax.f32 %v703_v28, 0.0  ;;  %v3570_v30 = vpop.f32.mrb[24].mxu0 }
 0x116   : > { %v718_v32 = vadd.f32 %v3570_v30, %v4218_v18  ;;  %v712_v33 = vpop.f32.mrb[25].mxu0 }
 0x117   : > { %v713_v34 = vadd.f32 %v4218_v18, %v712_v33  ;;  %3677 = vmatprep.mubr.msk.f32.mxu1 %vm987_vm4, %v933_v29 }
 0x118   : > { %3678 = vmatmul.mubr.msk.f32.gmra.mrb[22].mxu1 %vm987_vm4, %v934_v31  ;;  %v936_v37 = vmax.f32 %v718_v32, 0.0 }
 0x119   : > { %v935_v35 = vmax.f32 %v713_v34, 0.0  ;;  %v3573_v36 = vpop.f32.mrb[26].mxu0 }
 0x11a   : > { %v728_v38 = vadd.f32 %v3573_v36, %v4218_v18  ;;  %v722_v39 = vpop.f32.mrb[27].mxu0 }
 0x11b   : > { %v723_v40 = vadd.f32 %v4218_v18, %v722_v39  ;;  %3680 = vmatprep.mubr.msk.f32.mxu1 %vm987_vm4, %v935_v35 }
 0x11c   : > { %3681 = vmatmul.mubr.msk.f32.gmra.mrb[24].mxu1 %vm987_vm4, %v936_v37  ;;  %v938_v43 = vmax.f32 %v728_v38, 0.0 }
 0x11d   : > { %v937_v41 = vmax.f32 %v723_v40, 0.0  ;;  %v3576_v42 = vpop.f32.mrb[28].mxu0 }
 0x11e   : > { %v738_v44 = vadd.f32 %v3576_v42, %v4218_v18  ;;  %v732_v45 = vpop.f32.mrb[29].mxu0 }
 0x11f   : > { %v733_v46 = vadd.f32 %v4218_v18, %v732_v45  ;;  %3683 = vmatprep.mubr.msk.f32.mxu1 %vm987_vm4, %v937_v41 }
 0x120   : > { %3684 = vmatmul.mubr.msk.f32.gmra.mrb[26].mxu1 %vm987_vm4, %v938_v43  ;;  %v940_v49 = vmax.f32 %v738_v44, 0.0 }
 0x121   : > { %v939_v47 = vmax.f32 %v733_v46, 0.0  ;;  %v3579_v48 = vpop.f32.mrb[30].mxu0 }
 0x122   : > { %v748_v50 = vadd.f32 %v3579_v48, %v4218_v18  ;;  %v742_v51 = vpop.f32.mrb[31].mxu0 }
 0x123   : > { %v743_v52 = vadd.f32 %v4218_v18, %v742_v51  ;;  %3686 = vmatprep.mubr.msk.f32.mxu1 %vm987_vm4, %v939_v47 }
 0x124   : > { %3687 = vmatmul.mubr.msk.f32.gmra.mrb[28].mxu1 %vm987_vm4, %v940_v49  ;;  %v942_v55 = vmax.f32 %v748_v50, 0.0 }
 0x125   : > { %v941_v53 = vmax.f32 %v743_v52, 0.0  ;;  %v3582_v54 = vpop.f32.mrb[32].mxu0 }
 0x126   : > { %v758_v56 = vadd.f32 %v3582_v54, %v4218_v18  ;;  %v752_v57 = vpop.f32.mrb[33].mxu0 }
 0x127   : > { %v753_v58 = vadd.f32 %v4218_v18, %v752_v57  ;;  %3689 = vmatprep.mubr.msk.f32.mxu1 %vm987_vm4, %v941_v53 }
 0x128   : > { %3690 = vmatmul.mubr.msk.f32.gmra.mrb[30].mxu1 %vm987_vm4, %v942_v55  ;;  %v944_v61 = vmax.f32 %v758_v56, 0.0 }
 0x129   : > { %v943_v59 = vmax.f32 %v753_v58, 0.0  ;;  %v3585_v60 = vpop.f32.mrb[34].mxu0 }
 0x12a   : > { %v768_v62 = vadd.f32 %v3585_v60, %v4218_v18  ;;  %v762_v63 = vpop.f32.mrb[35].mxu0 }
 0x12b   : > { %v763_v0 = vadd.f32 %v4218_v18, %v762_v63  ;;  %3692 = vmatprep.mubr.msk.f32.mxu1 %vm987_vm4, %v943_v59 }
 0x12c   : > { %3693 = vmatmul.mubr.msk.f32.gmra.mrb[32].mxu1 %vm987_vm4, %v944_v61  ;;  %v946_v3 = vmax.f32 %v768_v62, 0.0 }
 0x12d   : > { %v945_v1 = vmax.f32 %v763_v0, 0.0  ;;  %v3588_v2 = vpop.f32.mrb[36].mxu0 }
 0x12e   : > { %v778_v4 = vadd.f32 %v3588_v2, %v4218_v18  ;;  %v772_v5 = vpop.f32.mrb[37].mxu0 }
 0x12f   : > { %v773_v6 = vadd.f32 %v4218_v18, %v772_v5  ;;  %3695 = vmatprep.mubr.msk.f32.mxu1 %vm987_vm4, %v945_v1 }
 0x130   : > { %3696 = vmatmul.mubr.msk.f32.gmra.mrb[34].mxu1 %vm987_vm4, %v946_v3  ;;  %v948_v9 = vmax.f32 %v778_v4, 0.0 }
 0x131   : > { %v947_v7 = vmax.f32 %v773_v6, 0.0  ;;  %v3591_v8 = vpop.f32.mrb[38].mxu0 }
 0x132   : > { %v788_v10 = vadd.f32 %v3591_v8, %v4218_v18  ;;  %v782_v11 = vpop.f32.mrb[39].mxu0 }
 0x133   : > { %v783_v12 = vadd.f32 %v4218_v18, %v782_v11  ;;  %3698 = vmatprep.mubr.msk.f32.mxu1 %vm987_vm4, %v947_v7 }
 0x134   : > { %3699 = vmatmul.mubr.msk.f32.gmra.mrb[36].mxu1 %vm987_vm4, %v948_v9  ;;  %v950_v15 = vmax.f32 %v788_v10, 0.0 }
 0x135   : > { %v949_v13 = vmax.f32 %v783_v12, 0.0  ;;  %v3594_v14 = vpop.f32.mrb[40].mxu0 }
 0x136   : > { %v798_v16 = vadd.f32 %v3594_v14, %v4218_v18  ;;  %v792_v17 = vpop.f32.mrb[41].mxu0 }
 0x137   : > { %v793_v19 = vadd.f32 %v4218_v18, %v792_v17  ;;  %3701 = vmatprep.mubr.msk.f32.mxu1 %vm987_vm4, %v949_v13 }
 0x138   : > { %3702 = vmatmul.mubr.msk.f32.gmra.mrb[38].mxu1 %vm987_vm4, %v950_v15  ;;  %v952_v22 = vmax.f32 %v798_v16, 0.0 }
 0x139   : > { %v951_v20 = vmax.f32 %v793_v19, 0.0  ;;  %v3597_v21 = vpop.f32.mrb[42].mxu0 }
 0x13a   : > { %v808_v23 = vadd.f32 %v3597_v21, %v4218_v18  ;;  %v802_v24 = vpop.f32.mrb[43].mxu0 }
 0x13b   : > { %v803_v25 = vadd.f32 %v4218_v18, %v802_v24  ;;  %3704 = vmatprep.mubr.msk.f32.mxu1 %vm987_vm4, %v951_v20 }
 0x13c   : > { %3705 = vmatmul.mubr.msk.f32.gmra.mrb[40].mxu1 %vm987_vm4, %v952_v22  ;;  %v954_v28 = vmax.f32 %v808_v23, 0.0 }
 0x13d   : > { %v953_v26 = vmax.f32 %v803_v25, 0.0  ;;  %v3600_v27 = vpop.f32.mrb[44].mxu0  ;;  %v2279_v25 = vld [vmem:[%s4837_s4] sm:$0xff] }
 0x13e   : > { %v818_v29 = vadd.f32 %v3600_v27, %v4218_v18  ;;  %v812_v30 = vpop.f32.mrb[45].mxu0 }
 0x13f   : > { %v813_v31 = vadd.f32 %v4218_v18, %v812_v30  ;;  %3707 = vmatprep.mubr.msk.f32.mxu1 %vm987_vm4, %v953_v26  ;;  %v2280_v26 = vld [vmem:[%s4837_s4 + $0x8] sm:$0xff] }
 0x140   : > { %3708 = vmatmul.mubr.msk.f32.gmra.mrb[42].mxu1 %vm987_vm4, %v954_v28  ;;  %v956_v34 = vmax.f32 %v818_v29, 0.0  ;;  %v3974_v27 = vpack.c.bf16 %v2280_v26, %v2279_v25 }
 0x141   : > { %v955_v32 = vmax.f32 %v813_v31, 0.0  ;;  %v3603_v33 = vpop.f32.mrb[46].mxu0 }
 0x142   : > { %v828_v35 = vadd.f32 %v3603_v33, %v4218_v18  ;;  %v822_v36 = vpop.f32.mrb[47].mxu0  ;;  %3978 = vmatprep.subr.bf16.mxu1 %v3974_v27  ;;  %3975 = vmatprep.subr.bf16.mxu0 %v3974_v27 }
 0x143   : > { %v823_v37 = vadd.f32 %v4218_v18, %v822_v36  ;;  %3710 = vmatprep.mubr.msk.f32.mxu1 %vm987_vm4, %v955_v32  ;;  %3979 = vmatpush3.bf16.msra.mxu1 %v3974_v27 }
 0x144   : > { %3711 = vmatmul.mubr.msk.f32.gmra.mrb[44].mxu1 %vm987_vm4, %v956_v34  ;;  %v958_v40 = vmax.f32 %v828_v35, 0.0 }
 0x145   : > { %v957_v38 = vmax.f32 %v823_v37, 0.0  ;;  %v3606_v39 = vpop.f32.mrb[48].mxu0 }
 0x146   : > { %v838_v41 = vadd.f32 %v3606_v39, %v4218_v18  ;;  %v832_v42 = vpop.f32.mrb[49].mxu0 }
 0x147   : > { %v833_v43 = vadd.f32 %v4218_v18, %v832_v42  ;;  %3713 = vmatprep.mubr.msk.f32.mxu1 %vm987_vm4, %v957_v38 }
 0x148   : > { %3714 = vmatmul.mubr.msk.f32.gmra.mrb[46].mxu1 %vm987_vm4, %v958_v40  ;;  %v960_v46 = vmax.f32 %v838_v41, 0.0 }
 0x149   : > { %v959_v44 = vmax.f32 %v833_v43, 0.0  ;;  %v3609_v45 = vpop.f32.mrb[50].mxu0 }
 0x14a   : > { %v848_v47 = vadd.f32 %v3609_v45, %v4218_v18  ;;  %v842_v48 = vpop.f32.mrb[51].mxu0 }
 0x14b   : > { %v843_v49 = vadd.f32 %v4218_v18, %v842_v48  ;;  %3716 = vmatprep.mubr.msk.f32.mxu1 %vm987_vm4, %v959_v44 }
 0x14c   : > { %3717 = vmatmul.mubr.msk.f32.gmra.mrb[48].mxu1 %vm987_vm4, %v960_v46  ;;  %v962_v52 = vmax.f32 %v848_v47, 0.0 }
 0x14d   : > { %v961_v50 = vmax.f32 %v843_v49, 0.0  ;;  %v3612_v51 = vpop.f32.mrb[52].mxu0 }
 0x14e   : > { %v858_v53 = vadd.f32 %v3612_v51, %v4218_v18  ;;  %v852_v54 = vpop.f32.mrb[53].mxu0 }
 0x14f   : > { %v853_v55 = vadd.f32 %v4218_v18, %v852_v54  ;;  %3719 = vmatprep.mubr.msk.f32.mxu1 %vm987_vm4, %v961_v50 }
 0x150   : > { %3720 = vmatmul.mubr.msk.f32.gmra.mrb[50].mxu1 %vm987_vm4, %v962_v52  ;;  %v964_v58 = vmax.f32 %v858_v53, 0.0 }
 0x151   : > { %v963_v56 = vmax.f32 %v853_v55, 0.0  ;;  %v3615_v57 = vpop.f32.mrb[54].mxu0 }
 0x152   : > { %v868_v59 = vadd.f32 %v3615_v57, %v4218_v18  ;;  %v862_v60 = vpop.f32.mrb[55].mxu0 }
 0x153   : > { %v863_v61 = vadd.f32 %v4218_v18, %v862_v60  ;;  %3722 = vmatprep.mubr.msk.f32.mxu1 %vm987_vm4, %v963_v56 }
 0x154   : > { %3723 = vmatmul.mubr.msk.f32.gmra.mrb[52].mxu1 %vm987_vm4, %v964_v58  ;;  %v966_v0 = vmax.f32 %v868_v59, 0.0 }
 0x155   : > { %v965_v62 = vmax.f32 %v863_v61, 0.0  ;;  %v3618_v63 = vpop.f32.mrb[56].mxu0 }
 0x156   : > { %v878_v1 = vadd.f32 %v3618_v63, %v4218_v18  ;;  %v872_v2 = vpop.f32.mrb[57].mxu0 }
 0x157   : > { %v873_v3 = vadd.f32 %v4218_v18, %v872_v2  ;;  %3725 = vmatprep.mubr.msk.f32.mxu1 %vm987_vm4, %v965_v62 }
 0x158   : > { %3726 = vmatmul.mubr.msk.f32.gmra.mrb[54].mxu1 %vm987_vm4, %v966_v0  ;;  %v968_v6 = vmax.f32 %v878_v1, 0.0 }
 0x159   : > { %v967_v4 = vmax.f32 %v873_v3, 0.0  ;;  %v3621_v5 = vpop.f32.mrb[58].mxu0 }
 0x15a   : > { %v888_v7 = vadd.f32 %v3621_v5, %v4218_v18  ;;  %v882_v8 = vpop.f32.mrb[59].mxu0 }
 0x15b   : > { %v883_v9 = vadd.f32 %v4218_v18, %v882_v8  ;;  %3728 = vmatprep.mubr.msk.f32.mxu1 %vm987_vm4, %v967_v4 }
 0x15c   : > { %3729 = vmatmul.mubr.msk.f32.gmra.mrb[56].mxu1 %vm987_vm4, %v968_v6  ;;  %v970_v12 = vmax.f32 %v888_v7, 0.0 }
 0x15d   : > { %v969_v10 = vmax.f32 %v883_v9, 0.0  ;;  %v3624_v11 = vpop.f32.mrb[60].mxu0 }
 0x15e   : > { %v898_v13 = vadd.f32 %v3624_v11, %v4218_v18  ;;  %v892_v14 = vpop.f32.mrb[61].mxu0 }
 0x15f   : > { %v893_v15 = vadd.f32 %v4218_v18, %v892_v14  ;;  %3731 = vmatprep.mubr.msk.f32.mxu1 %vm987_vm4, %v969_v10 }
 0x160   : > { %3732 = vmatmul.mubr.msk.f32.gmra.mrb[58].mxu1 %vm987_vm4, %v970_v12  ;;  %v972_v19 = vmax.f32 %v898_v13, 0.0 }
 0x161   : > { %v971_v16 = vmax.f32 %v893_v15, 0.0  ;;  %v3627_v17 = vpop.f32.mrb[62].mxu0 }
 0x162   : > { %v908_v20 = vadd.f32 %v3627_v17, %v4218_v18  ;;  %v902_v21 = vpop.f32.mrb[63].mxu0 }
 0x163   : > { %v903_v22 = vadd.f32 %v4218_v18, %v902_v21  ;;  %3734 = vmatprep.mubr.msk.f32.mxu1 %vm987_vm4, %v971_v16  ;;  %v4363_v18 = vld [vmem:[%s4838_s5 + $0x1] ss:$0 sm:$0xff] }
 0x164   : > { %3735 = vmatmul.mubr.msk.f32.gmra.mrb[60].mxu1 %vm987_vm4, %v972_v19  ;;  %v974_v24 = vmax.f32 %v908_v20, 0.0 }
 0x165   : > { %v973_v23 = vmax.f32 %v903_v22, 0.0 }
 0x167   : > { %3737 = vmatprep.mubr.msk.f32.mxu1 %vm987_vm4, %v973_v23 }
 0x168   : > { %3738 = vmatmul.mubr.msk.f32.gmra.mrb[62].mxu1 %vm987_vm4, %v974_v24 }
 0x1bf   : > { %v3646_v28 = vpop.f32.mrb[0].mxu1 }
 0x1c0   : > { %v1252_v29 = vadd.f32 %v3646_v28, %v4363_v18  ;;  %v1246_v30 = vpop.f32.mrb[1].mxu1 }
 0x1c1   : > { %v1247_v31 = vadd.f32 %v4363_v18, %v1246_v30 }
 0x1c2   : > { %v1566_v34 = vmax.f32 %v1252_v29, 0.0 }
 0x1c3   : > { %v1565_v32 = vmax.f32 %v1247_v31, 0.0  ;;  %v3649_v33 = vpop.f32.mrb[2].mxu1 }
 0x1c4   : > { %v1262_v35 = vadd.f32 %v3649_v33, %v4363_v18  ;;  %v1256_v36 = vpop.f32.mrb[3].mxu1 }
 0x1c5   : > { %v1257_v37 = vadd.f32 %v4363_v18, %v1256_v36  ;;  %3748 = vmatprep.mubr.msk.f32.mxu0 %vm1637_vm5, %v1565_v32 }
 0x1c6   : > { %3749 = vmatmul.mubr.msk.f32.vlgmr.msra.gmra.mrb[64].mxu0 %vm1637_vm5, %v1566_v34  ;;  %v1568_v40 = vmax.f32 %v1262_v35, 0.0 }
 0x1c7   : > { %v1567_v38 = vmax.f32 %v1257_v37, 0.0  ;;  %v3652_v39 = vpop.f32.mrb[4].mxu1  ;;  %3977 = vmatpush3.bf16.msra.mxu0 %v3974_v27 }
 0x1c8   : > { %v1272_v41 = vadd.f32 %v3652_v39, %v4363_v18  ;;  %v1266_v42 = vpop.f32.mrb[5].mxu1 }
 0x1c9   : > { %v1267_v43 = vadd.f32 %v4363_v18, %v1266_v42  ;;  %3751 = vmatprep.mubr.msk.f32.mxu0 %vm1637_vm5, %v1567_v38 }
 0x1ca   : > { %3752 = vmatmul.mubr.msk.f32.gmra.mrb[66].mxu0 %vm1637_vm5, %v1568_v40  ;;  %v1570_v46 = vmax.f32 %v1272_v41, 0.0 }
 0x1cb   : > { %v1569_v44 = vmax.f32 %v1267_v43, 0.0  ;;  %v3655_v45 = vpop.f32.mrb[6].mxu1 }
 0x1cc   : > { %v1282_v47 = vadd.f32 %v3655_v45, %v4363_v18  ;;  %v1276_v48 = vpop.f32.mrb[7].mxu1 }
 0x1cd   : > { %v1277_v49 = vadd.f32 %v4363_v18, %v1276_v48  ;;  %3754 = vmatprep.mubr.msk.f32.mxu0 %vm1637_vm5, %v1569_v44 }
 0x1ce   : > { %3755 = vmatmul.mubr.msk.f32.gmra.mrb[68].mxu0 %vm1637_vm5, %v1570_v46  ;;  %v1572_v52 = vmax.f32 %v1282_v47, 0.0 }
 0x1cf   : > { %v1571_v50 = vmax.f32 %v1277_v49, 0.0  ;;  %v3658_v51 = vpop.f32.mrb[8].mxu1 }
 0x1d0   : > { %v1292_v53 = vadd.f32 %v3658_v51, %v4363_v18  ;;  %v1286_v54 = vpop.f32.mrb[9].mxu1 }
 0x1d1   : > { %v1287_v55 = vadd.f32 %v4363_v18, %v1286_v54  ;;  %3757 = vmatprep.mubr.msk.f32.mxu0 %vm1637_vm5, %v1571_v50 }
 0x1d2   : > { %3758 = vmatmul.mubr.msk.f32.gmra.mrb[70].mxu0 %vm1637_vm5, %v1572_v52  ;;  %v1574_v58 = vmax.f32 %v1292_v53, 0.0 }
 0x1d3   : > { %v1573_v56 = vmax.f32 %v1287_v55, 0.0  ;;  %v3661_v57 = vpop.f32.mrb[10].mxu1 }
 0x1d4   : > { %v1302_v59 = vadd.f32 %v3661_v57, %v4363_v18  ;;  %v1296_v60 = vpop.f32.mrb[11].mxu1 }
 0x1d5   : > { %v1297_v61 = vadd.f32 %v4363_v18, %v1296_v60  ;;  %3760 = vmatprep.mubr.msk.f32.mxu0 %vm1637_vm5, %v1573_v56 }
 0x1d6   : > { %3761 = vmatmul.mubr.msk.f32.gmra.mrb[72].mxu0 %vm1637_vm5, %v1574_v58  ;;  %v1576_v0 = vmax.f32 %v1302_v59, 0.0 }
 0x1d7   : > { %v1575_v62 = vmax.f32 %v1297_v61, 0.0  ;;  %v3664_v63 = vpop.f32.mrb[12].mxu1 }
 0x1d8   : > { %v1312_v1 = vadd.f32 %v3664_v63, %v4363_v18  ;;  %v1306_v2 = vpop.f32.mrb[13].mxu1 }
 0x1d9   : > { %v1307_v3 = vadd.f32 %v4363_v18, %v1306_v2  ;;  %3763 = vmatprep.mubr.msk.f32.mxu0 %vm1637_vm5, %v1575_v62 }
 0x1da   : > { %3764 = vmatmul.mubr.msk.f32.gmra.mrb[74].mxu0 %vm1637_vm5, %v1576_v0  ;;  %v1578_v6 = vmax.f32 %v1312_v1, 0.0 }
 0x1db   : > { %v1577_v4 = vmax.f32 %v1307_v3, 0.0  ;;  %v3667_v5 = vpop.f32.mrb[14].mxu1 }
 0x1dc   : > { %v1322_v7 = vadd.f32 %v3667_v5, %v4363_v18  ;;  %v1316_v8 = vpop.f32.mrb[15].mxu1 }
 0x1dd   : > { %v1317_v9 = vadd.f32 %v4363_v18, %v1316_v8  ;;  %3766 = vmatprep.mubr.msk.f32.mxu0 %vm1637_vm5, %v1577_v4 }
 0x1de   : > { %3767 = vmatmul.mubr.msk.f32.gmra.mrb[76].mxu0 %vm1637_vm5, %v1578_v6  ;;  %v1580_v12 = vmax.f32 %v1322_v7, 0.0 }
 0x1df   : > { %v1579_v10 = vmax.f32 %v1317_v9, 0.0  ;;  %v3670_v11 = vpop.f32.mrb[16].mxu1 }
 0x1e0   : > { %v1332_v13 = vadd.f32 %v3670_v11, %v4363_v18  ;;  %v1326_v14 = vpop.f32.mrb[17].mxu1 }
 0x1e1   : > { %v1327_v15 = vadd.f32 %v4363_v18, %v1326_v14  ;;  %3769 = vmatprep.mubr.msk.f32.mxu0 %vm1637_vm5, %v1579_v10 }
 0x1e2   : > { %3770 = vmatmul.mubr.msk.f32.gmra.mrb[78].mxu0 %vm1637_vm5, %v1580_v12  ;;  %v1582_v19 = vmax.f32 %v1332_v13, 0.0 }
 0x1e3   : > { %v1581_v16 = vmax.f32 %v1327_v15, 0.0  ;;  %v3673_v17 = vpop.f32.mrb[18].mxu1 }
 0x1e4   : > { %v1342_v20 = vadd.f32 %v3673_v17, %v4363_v18  ;;  %v1336_v21 = vpop.f32.mrb[19].mxu1 }
 0x1e5   : > { %v1337_v22 = vadd.f32 %v4363_v18, %v1336_v21  ;;  %3772 = vmatprep.mubr.msk.f32.mxu0 %vm1637_vm5, %v1581_v16 }
 0x1e6   : > { %3773 = vmatmul.mubr.msk.f32.gmra.mrb[80].mxu0 %vm1637_vm5, %v1582_v19  ;;  %v1584_v25 = vmax.f32 %v1342_v20, 0.0 }
 0x1e7   : > { %v1583_v23 = vmax.f32 %v1337_v22, 0.0  ;;  %v3676_v24 = vpop.f32.mrb[20].mxu1 }
 0x1e8   : > { %v1352_v26 = vadd.f32 %v3676_v24, %v4363_v18  ;;  %v1346_v27 = vpop.f32.mrb[21].mxu1 }
 0x1e9   : > { %v1347_v28 = vadd.f32 %v4363_v18, %v1346_v27  ;;  %3775 = vmatprep.mubr.msk.f32.mxu0 %vm1637_vm5, %v1583_v23 }
 0x1ea   : > { %3776 = vmatmul.mubr.msk.f32.gmra.mrb[82].mxu0 %vm1637_vm5, %v1584_v25  ;;  %v1586_v31 = vmax.f32 %v1352_v26, 0.0 }
 0x1eb   : > { %v1585_v29 = vmax.f32 %v1347_v28, 0.0  ;;  %v3679_v30 = vpop.f32.mrb[22].mxu1 }
 0x1ec   : > { %v1362_v32 = vadd.f32 %v3679_v30, %v4363_v18  ;;  %v1356_v33 = vpop.f32.mrb[23].mxu1 }
 0x1ed   : > { %v1357_v34 = vadd.f32 %v4363_v18, %v1356_v33  ;;  %3778 = vmatprep.mubr.msk.f32.mxu0 %vm1637_vm5, %v1585_v29 }
 0x1ee   : > { %3779 = vmatmul.mubr.msk.f32.gmra.mrb[84].mxu0 %vm1637_vm5, %v1586_v31  ;;  %v1588_v37 = vmax.f32 %v1362_v32, 0.0 }
 0x1ef   : > { %v1587_v35 = vmax.f32 %v1357_v34, 0.0  ;;  %v3682_v36 = vpop.f32.mrb[24].mxu1 }
 0x1f0   : > { %v1372_v38 = vadd.f32 %v3682_v36, %v4363_v18  ;;  %v1366_v39 = vpop.f32.mrb[25].mxu1 }
 0x1f1   : > { %v1367_v40 = vadd.f32 %v4363_v18, %v1366_v39  ;;  %3781 = vmatprep.mubr.msk.f32.mxu0 %vm1637_vm5, %v1587_v35 }
 0x1f2   : > { %3782 = vmatmul.mubr.msk.f32.gmra.mrb[86].mxu0 %vm1637_vm5, %v1588_v37  ;;  %v1590_v43 = vmax.f32 %v1372_v38, 0.0 }
 0x1f3   : > { %v1589_v41 = vmax.f32 %v1367_v40, 0.0  ;;  %v3685_v42 = vpop.f32.mrb[26].mxu1 }
 0x1f4   : > { %v1382_v44 = vadd.f32 %v3685_v42, %v4363_v18  ;;  %v1376_v45 = vpop.f32.mrb[27].mxu1 }
 0x1f5   : > { %v1377_v46 = vadd.f32 %v4363_v18, %v1376_v45  ;;  %3784 = vmatprep.mubr.msk.f32.mxu0 %vm1637_vm5, %v1589_v41 }
 0x1f6   : > { %3785 = vmatmul.mubr.msk.f32.gmra.mrb[88].mxu0 %vm1637_vm5, %v1590_v43  ;;  %v1592_v49 = vmax.f32 %v1382_v44, 0.0 }
 0x1f7   : > { %v1591_v47 = vmax.f32 %v1377_v46, 0.0  ;;  %v3688_v48 = vpop.f32.mrb[28].mxu1 }
 0x1f8   : > { %v1392_v50 = vadd.f32 %v3688_v48, %v4363_v18  ;;  %v1386_v51 = vpop.f32.mrb[29].mxu1 }
 0x1f9   : > { %v1387_v52 = vadd.f32 %v4363_v18, %v1386_v51  ;;  %3787 = vmatprep.mubr.msk.f32.mxu0 %vm1637_vm5, %v1591_v47 }
 0x1fa   : > { %3788 = vmatmul.mubr.msk.f32.gmra.mrb[90].mxu0 %vm1637_vm5, %v1592_v49  ;;  %v1594_v55 = vmax.f32 %v1392_v50, 0.0 }
 0x1fb   : > { %v1593_v53 = vmax.f32 %v1387_v52, 0.0  ;;  %v3691_v54 = vpop.f32.mrb[30].mxu1 }
 0x1fc   : > { %v1402_v56 = vadd.f32 %v3691_v54, %v4363_v18  ;;  %v1396_v57 = vpop.f32.mrb[31].mxu1 }
 0x1fd   : > { %v1397_v58 = vadd.f32 %v4363_v18, %v1396_v57  ;;  %3790 = vmatprep.mubr.msk.f32.mxu0 %vm1637_vm5, %v1593_v53 }
 0x1fe   : > { %3791 = vmatmul.mubr.msk.f32.gmra.mrb[92].mxu0 %vm1637_vm5, %v1594_v55  ;;  %v1596_v61 = vmax.f32 %v1402_v56, 0.0 }
 0x1ff   : > { %v1595_v59 = vmax.f32 %v1397_v58, 0.0  ;;  %v3694_v60 = vpop.f32.mrb[32].mxu1 }
 0x200   : > { %v1412_v62 = vadd.f32 %v3694_v60, %v4363_v18  ;;  %v1406_v63 = vpop.f32.mrb[33].mxu1 }
 0x201   : > { %v1407_v0 = vadd.f32 %v4363_v18, %v1406_v63  ;;  %3793 = vmatprep.mubr.msk.f32.mxu0 %vm1637_vm5, %v1595_v59 }
 0x202   : > { %3794 = vmatmul.mubr.msk.f32.gmra.mrb[94].mxu0 %vm1637_vm5, %v1596_v61  ;;  %v1598_v3 = vmax.f32 %v1412_v62, 0.0 }
 0x203   : > { %v1597_v1 = vmax.f32 %v1407_v0, 0.0  ;;  %v3697_v2 = vpop.f32.mrb[34].mxu1 }
 0x204   : > { %v1422_v4 = vadd.f32 %v3697_v2, %v4363_v18  ;;  %v1416_v5 = vpop.f32.mrb[35].mxu1 }
 0x205   : > { %v1417_v6 = vadd.f32 %v4363_v18, %v1416_v5  ;;  %3796 = vmatprep.mubr.msk.f32.mxu0 %vm1637_vm5, %v1597_v1 }
 0x206   : > { %3797 = vmatmul.mubr.msk.f32.gmra.mrb[96].mxu0 %vm1637_vm5, %v1598_v3  ;;  %v1600_v9 = vmax.f32 %v1422_v4, 0.0 }
 0x207   : > { %v1599_v7 = vmax.f32 %v1417_v6, 0.0  ;;  %v3700_v8 = vpop.f32.mrb[36].mxu1 }
 0x208   : > { %v1432_v10 = vadd.f32 %v3700_v8, %v4363_v18  ;;  %v1426_v11 = vpop.f32.mrb[37].mxu1 }
 0x209   : > { %v1427_v12 = vadd.f32 %v4363_v18, %v1426_v11  ;;  %3799 = vmatprep.mubr.msk.f32.mxu0 %vm1637_vm5, %v1599_v7 }
 0x20a   : > { %3800 = vmatmul.mubr.msk.f32.gmra.mrb[98].mxu0 %vm1637_vm5, %v1600_v9  ;;  %v1602_v15 = vmax.f32 %v1432_v10, 0.0 }
 0x20b   : > { %v1601_v13 = vmax.f32 %v1427_v12, 0.0  ;;  %v3703_v14 = vpop.f32.mrb[38].mxu1 }
 0x20c   : > { %v1442_v16 = vadd.f32 %v3703_v14, %v4363_v18  ;;  %v1436_v17 = vpop.f32.mrb[39].mxu1 }
 0x20d   : > { %v1437_v19 = vadd.f32 %v4363_v18, %v1436_v17  ;;  %3802 = vmatprep.mubr.msk.f32.mxu0 %vm1637_vm5, %v1601_v13 }
 0x20e   : > { %3803 = vmatmul.mubr.msk.f32.gmra.mrb[100].mxu0 %vm1637_vm5, %v1602_v15  ;;  %v1604_v22 = vmax.f32 %v1442_v16, 0.0 }
 0x20f   : > { %v1603_v20 = vmax.f32 %v1437_v19, 0.0  ;;  %v3706_v21 = vpop.f32.mrb[40].mxu1 }
 0x210   : > { %v1452_v23 = vadd.f32 %v3706_v21, %v4363_v18  ;;  %v1446_v24 = vpop.f32.mrb[41].mxu1 }
 0x211   : > { %v1447_v25 = vadd.f32 %v4363_v18, %v1446_v24  ;;  %3805 = vmatprep.mubr.msk.f32.mxu0 %vm1637_vm5, %v1603_v20 }
 0x212   : > { %3806 = vmatmul.mubr.msk.f32.gmra.mrb[102].mxu0 %vm1637_vm5, %v1604_v22  ;;  %v1606_v28 = vmax.f32 %v1452_v23, 0.0 }
 0x213   : > { %v1605_v26 = vmax.f32 %v1447_v25, 0.0  ;;  %v3709_v27 = vpop.f32.mrb[42].mxu1 }
 0x214   : > { %v1462_v29 = vadd.f32 %v3709_v27, %v4363_v18  ;;  %v1456_v30 = vpop.f32.mrb[43].mxu1 }
 0x215   : > { %v1457_v31 = vadd.f32 %v4363_v18, %v1456_v30  ;;  %3808 = vmatprep.mubr.msk.f32.mxu0 %vm1637_vm5, %v1605_v26 }
 0x216   : > { %3809 = vmatmul.mubr.msk.f32.gmra.mrb[104].mxu0 %vm1637_vm5, %v1606_v28  ;;  %v1608_v34 = vmax.f32 %v1462_v29, 0.0 }
 0x217   : > { %v1607_v32 = vmax.f32 %v1457_v31, 0.0  ;;  %v3712_v33 = vpop.f32.mrb[44].mxu1  ;;  %v4496_v31 = vld [vmem:[%s4838_s5 + $0x2] ss:$0 sm:$0xff] }
 0x218   : > { %v1472_v35 = vadd.f32 %v3712_v33, %v4363_v18  ;;  %v1466_v36 = vpop.f32.mrb[45].mxu1 }
 0x219   : > { %v1467_v37 = vadd.f32 %v4363_v18, %v1466_v36  ;;  %3811 = vmatprep.mubr.msk.f32.mxu0 %vm1637_vm5, %v1607_v32 }
 0x21a   : > { %3812 = vmatmul.mubr.msk.f32.gmra.mrb[106].mxu0 %vm1637_vm5, %v1608_v34  ;;  %v1610_v40 = vmax.f32 %v1472_v35, 0.0 }
 0x21b   : > { %v1609_v38 = vmax.f32 %v1467_v37, 0.0  ;;  %v3715_v39 = vpop.f32.mrb[46].mxu1 }
 0x21c   : > { %v1482_v41 = vadd.f32 %v3715_v39, %v4363_v18  ;;  %v1476_v42 = vpop.f32.mrb[47].mxu1 }
 0x21d   : > { %v1477_v43 = vadd.f32 %v4363_v18, %v1476_v42  ;;  %3814 = vmatprep.mubr.msk.f32.mxu0 %vm1637_vm5, %v1609_v38 }
 0x21e   : > { %3815 = vmatmul.mubr.msk.f32.gmra.mrb[108].mxu0 %vm1637_vm5, %v1610_v40  ;;  %v1612_v46 = vmax.f32 %v1482_v41, 0.0 }
 0x21f   : > { %v1611_v44 = vmax.f32 %v1477_v43, 0.0  ;;  %v3718_v45 = vpop.f32.mrb[48].mxu1 }
 0x220   : > { %v1492_v47 = vadd.f32 %v3718_v45, %v4363_v18  ;;  %v1486_v48 = vpop.f32.mrb[49].mxu1 }
 0x221   : > { %v1487_v49 = vadd.f32 %v4363_v18, %v1486_v48  ;;  %3817 = vmatprep.mubr.msk.f32.mxu0 %vm1637_vm5, %v1611_v44 }
 0x222   : > { %3818 = vmatmul.mubr.msk.f32.gmra.mrb[110].mxu0 %vm1637_vm5, %v1612_v46  ;;  %v1614_v52 = vmax.f32 %v1492_v47, 0.0 }
 0x223   : > { %v1613_v50 = vmax.f32 %v1487_v49, 0.0  ;;  %v3721_v51 = vpop.f32.mrb[50].mxu1 }
 0x224   : > { %v1502_v53 = vadd.f32 %v3721_v51, %v4363_v18  ;;  %v1496_v54 = vpop.f32.mrb[51].mxu1 }
 0x225   : > { %v1497_v55 = vadd.f32 %v4363_v18, %v1496_v54  ;;  %3820 = vmatprep.mubr.msk.f32.mxu0 %vm1637_vm5, %v1613_v50 }
 0x226   : > { %3821 = vmatmul.mubr.msk.f32.gmra.mrb[112].mxu0 %vm1637_vm5, %v1614_v52  ;;  %v1616_v58 = vmax.f32 %v1502_v53, 0.0 }
 0x227   : > { %v1615_v56 = vmax.f32 %v1497_v55, 0.0  ;;  %v3724_v57 = vpop.f32.mrb[52].mxu1 }
 0x228   : > { %v1512_v59 = vadd.f32 %v3724_v57, %v4363_v18  ;;  %v1506_v60 = vpop.f32.mrb[53].mxu1 }
 0x229   : > { %v1507_v61 = vadd.f32 %v4363_v18, %v1506_v60  ;;  %3823 = vmatprep.mubr.msk.f32.mxu0 %vm1637_vm5, %v1615_v56 }
 0x22a   : > { %3824 = vmatmul.mubr.msk.f32.gmra.mrb[114].mxu0 %vm1637_vm5, %v1616_v58  ;;  %v1618_v0 = vmax.f32 %v1512_v59, 0.0 }
 0x22b   : > { %v1617_v62 = vmax.f32 %v1507_v61, 0.0  ;;  %v3727_v63 = vpop.f32.mrb[54].mxu1 }
 0x22c   : > { %v1522_v1 = vadd.f32 %v3727_v63, %v4363_v18  ;;  %v1516_v2 = vpop.f32.mrb[55].mxu1 }
 0x22d   : > { %v1517_v3 = vadd.f32 %v4363_v18, %v1516_v2  ;;  %3826 = vmatprep.mubr.msk.f32.mxu0 %vm1637_vm5, %v1617_v62 }
 0x22e   : > { %3827 = vmatmul.mubr.msk.f32.gmra.mrb[116].mxu0 %vm1637_vm5, %v1618_v0  ;;  %v1620_v6 = vmax.f32 %v1522_v1, 0.0 }
 0x22f   : > { %v1619_v4 = vmax.f32 %v1517_v3, 0.0  ;;  %v3730_v5 = vpop.f32.mrb[56].mxu1 }
 0x230   : > { %v1532_v7 = vadd.f32 %v3730_v5, %v4363_v18  ;;  %v1526_v8 = vpop.f32.mrb[57].mxu1 }
 0x231   : > { %v1527_v9 = vadd.f32 %v4363_v18, %v1526_v8  ;;  %3829 = vmatprep.mubr.msk.f32.mxu0 %vm1637_vm5, %v1619_v4 }
 0x232   : > { %3830 = vmatmul.mubr.msk.f32.gmra.mrb[118].mxu0 %vm1637_vm5, %v1620_v6  ;;  %v1622_v12 = vmax.f32 %v1532_v7, 0.0 }
 0x233   : > { %v1621_v10 = vmax.f32 %v1527_v9, 0.0  ;;  %v3733_v11 = vpop.f32.mrb[58].mxu1 }
 0x234   : > { %v1542_v13 = vadd.f32 %v3733_v11, %v4363_v18  ;;  %v1536_v14 = vpop.f32.mrb[59].mxu1 }
 0x235   : > { %v1537_v15 = vadd.f32 %v4363_v18, %v1536_v14  ;;  %3832 = vmatprep.mubr.msk.f32.mxu0 %vm1637_vm5, %v1621_v10 }
 0x236   : > { %3833 = vmatmul.mubr.msk.f32.gmra.mrb[120].mxu0 %vm1637_vm5, %v1622_v12  ;;  %v1624_v19 = vmax.f32 %v1542_v13, 0.0 }
 0x237   : > { %v1623_v16 = vmax.f32 %v1537_v15, 0.0  ;;  %v3736_v17 = vpop.f32.mrb[60].mxu1 }
 0x238   : > { %v1552_v20 = vadd.f32 %v3736_v17, %v4363_v18  ;;  %v1546_v21 = vpop.f32.mrb[61].mxu1 }
 0x239   : > { %v1547_v22 = vadd.f32 %v4363_v18, %v1546_v21  ;;  %3835 = vmatprep.mubr.msk.f32.mxu0 %vm1637_vm5, %v1623_v16 }
 0x23a   : > { %3836 = vmatmul.mubr.msk.f32.gmra.mrb[122].mxu0 %vm1637_vm5, %v1624_v19  ;;  %v1626_v25 = vmax.f32 %v1552_v20, 0.0 }
 0x23b   : > { %v1625_v23 = vmax.f32 %v1547_v22, 0.0  ;;  %v3739_v24 = vpop.f32.mrb[62].mxu1 }
 0x23c   : > { %v1562_v26 = vadd.f32 %v3739_v24, %v4363_v18  ;;  %v1556_v27 = vpop.f32.mrb[63].mxu1 }
 0x23d   : > { %v1557_v28 = vadd.f32 %v4363_v18, %v1556_v27  ;;  %3838 = vmatprep.mubr.msk.f32.mxu0 %vm1637_vm5, %v1625_v23 }
 0x23e   : > { %3839 = vmatmul.mubr.msk.f32.gmra.mrb[124].mxu0 %vm1637_vm5, %v1626_v25  ;;  %v1628_v30 = vmax.f32 %v1562_v26, 0.0 }
 0x23f   : > { %v1627_v29 = vmax.f32 %v1557_v28, 0.0 }
 0x241   : > { %3841 = vmatprep.mubr.msk.f32.mxu0 %vm1637_vm5, %v1627_v29 }
 0x242   : > { %3842 = vmatmul.mubr.msk.f32.gmra.mrb[126].mxu0 %vm1637_vm5, %v1628_v30 }
 0x299   : > { %v3750_v32 = vpop.f32.mrb[64].mxu0 }
 0x29a   : > { %v1902_v33 = vadd.f32 %v3750_v32, %v4496_v31  ;;  %v1896_v34 = vpop.f32.mrb[65].mxu0 }
 0x29b   : > { %v1897_v18 = vadd.f32 %v4496_v31, %v1896_v34 }
 0x29c   : > { %v2216_v37 = vmax.f32 %v1902_v33, 0.0 }
 0x29d   : > { %v2215_v35 = vmax.f32 %v1897_v18, 0.0  ;;  %v3753_v36 = vpop.f32.mrb[66].mxu0 }
 0x29e   : > { %v1912_v38 = vadd.f32 %v3753_v36, %v4496_v31  ;;  %v1906_v39 = vpop.f32.mrb[67].mxu0 }
 0x29f   : > { %v1907_v40 = vadd.f32 %v4496_v31, %v1906_v39  ;;  %3848 = vmatprep.mubr.msk.f32.mxu0 %vm2285_vm6, %v2215_v35 }
 0x2a0   : > { %3849 = vmatmul.mubr.msk.f32.vlgmr.msra.gmra.mrb[128].mxu0 %vm2285_vm6, %v2216_v37  ;;  %v2218_v43 = vmax.f32 %v1912_v38, 0.0 }
 0x2a1   : > { %v2217_v41 = vmax.f32 %v1907_v40, 0.0  ;;  %v3756_v42 = vpop.f32.mrb[68].mxu0 }
 0x2a2   : > { %v1922_v44 = vadd.f32 %v3756_v42, %v4496_v31  ;;  %v1916_v45 = vpop.f32.mrb[69].mxu0 }
 0x2a3   : > { %v1917_v46 = vadd.f32 %v4496_v31, %v1916_v45  ;;  %3851 = vmatprep.mubr.msk.f32.mxu1 %vm2285_vm6, %v2217_v41 }
 0x2a4   : > { %3852 = vmatmul.mubr.msk.f32.vlgmr.msra.gmra.mrb[64].mxu1 %vm2285_vm6, %v2218_v43  ;;  %v2220_v49 = vmax.f32 %v1922_v44, 0.0 }
 0x2a5   : > { %v2219_v47 = vmax.f32 %v1917_v46, 0.0  ;;  %v3759_v48 = vpop.f32.mrb[70].mxu0 }
 0x2a6   : > { %v1932_v50 = vadd.f32 %v3759_v48, %v4496_v31  ;;  %v1926_v51 = vpop.f32.mrb[71].mxu0 }
 0x2a7   : > { %v1927_v52 = vadd.f32 %v4496_v31, %v1926_v51  ;;  %3854 = vmatprep.mubr.msk.f32.mxu1 %vm2285_vm6, %v2219_v47 }
 0x2a8   : > { %3855 = vmatmul.mubr.msk.f32.gmra.mrb[66].mxu1 %vm2285_vm6, %v2220_v49  ;;  %v2222_v55 = vmax.f32 %v1932_v50, 0.0 }
 0x2a9   : > { %v2221_v53 = vmax.f32 %v1927_v52, 0.0  ;;  %v3762_v54 = vpop.f32.mrb[72].mxu0 }
 0x2aa   : > { %v1942_v56 = vadd.f32 %v3762_v54, %v4496_v31  ;;  %v1936_v57 = vpop.f32.mrb[73].mxu0 }
 0x2ab   : > { %v1937_v58 = vadd.f32 %v4496_v31, %v1936_v57  ;;  %3857 = vmatprep.mubr.msk.f32.mxu1 %vm2285_vm6, %v2221_v53 }
 0x2ac   : > { %3858 = vmatmul.mubr.msk.f32.gmra.mrb[68].mxu1 %vm2285_vm6, %v2222_v55  ;;  %v2224_v61 = vmax.f32 %v1942_v56, 0.0 }
 0x2ad   : > { %v2223_v59 = vmax.f32 %v1937_v58, 0.0  ;;  %v3765_v60 = vpop.f32.mrb[74].mxu0 }
 0x2ae   : > { %v1952_v62 = vadd.f32 %v3765_v60, %v4496_v31  ;;  %v1946_v63 = vpop.f32.mrb[75].mxu0 }
 0x2af   : > { %v1947_v0 = vadd.f32 %v4496_v31, %v1946_v63  ;;  %3860 = vmatprep.mubr.msk.f32.mxu1 %vm2285_vm6, %v2223_v59 }
 0x2b0   : > { %3861 = vmatmul.mubr.msk.f32.gmra.mrb[70].mxu1 %vm2285_vm6, %v2224_v61  ;;  %v2226_v3 = vmax.f32 %v1952_v62, 0.0 }
 0x2b1   : > { %v2225_v1 = vmax.f32 %v1947_v0, 0.0  ;;  %v3768_v2 = vpop.f32.mrb[76].mxu0 }
 0x2b2   : > { %v1962_v4 = vadd.f32 %v3768_v2, %v4496_v31  ;;  %v1956_v5 = vpop.f32.mrb[77].mxu0 }
 0x2b3   : > { %v1957_v6 = vadd.f32 %v4496_v31, %v1956_v5  ;;  %3863 = vmatprep.mubr.msk.f32.mxu1 %vm2285_vm6, %v2225_v1 }
 0x2b4   : > { %3864 = vmatmul.mubr.msk.f32.gmra.mrb[72].mxu1 %vm2285_vm6, %v2226_v3  ;;  %v2228_v9 = vmax.f32 %v1962_v4, 0.0 }
 0x2b5   : > { %v2227_v7 = vmax.f32 %v1957_v6, 0.0  ;;  %v3771_v8 = vpop.f32.mrb[78].mxu0 }
 0x2b6   : > { %v1972_v10 = vadd.f32 %v3771_v8, %v4496_v31  ;;  %v1966_v11 = vpop.f32.mrb[79].mxu0 }
 0x2b7   : > { %v1967_v12 = vadd.f32 %v4496_v31, %v1966_v11  ;;  %3866 = vmatprep.mubr.msk.f32.mxu1 %vm2285_vm6, %v2227_v7 }
 0x2b8   : > { %3867 = vmatmul.mubr.msk.f32.gmra.mrb[74].mxu1 %vm2285_vm6, %v2228_v9  ;;  %v2230_v15 = vmax.f32 %v1972_v10, 0.0 }
 0x2b9   : > { %v2229_v13 = vmax.f32 %v1967_v12, 0.0  ;;  %v3774_v14 = vpop.f32.mrb[80].mxu0 }
 0x2ba   : > { %v1982_v16 = vadd.f32 %v3774_v14, %v4496_v31  ;;  %v1976_v17 = vpop.f32.mrb[81].mxu0 }
 0x2bb   : > { %v1977_v19 = vadd.f32 %v4496_v31, %v1976_v17  ;;  %3869 = vmatprep.mubr.msk.f32.mxu1 %vm2285_vm6, %v2229_v13 }
 0x2bc   : > { %3870 = vmatmul.mubr.msk.f32.gmra.mrb[76].mxu1 %vm2285_vm6, %v2230_v15  ;;  %v2232_v22 = vmax.f32 %v1982_v16, 0.0 }
 0x2bd   : > { %v2231_v20 = vmax.f32 %v1977_v19, 0.0  ;;  %v3777_v21 = vpop.f32.mrb[82].mxu0 }
 0x2be   : > { %v1992_v23 = vadd.f32 %v3777_v21, %v4496_v31  ;;  %v1986_v24 = vpop.f32.mrb[83].mxu0 }
 0x2bf   : > { %v1987_v25 = vadd.f32 %v4496_v31, %v1986_v24  ;;  %3872 = vmatprep.mubr.msk.f32.mxu1 %vm2285_vm6, %v2231_v20 }
 0x2c0   : > { %3873 = vmatmul.mubr.msk.f32.gmra.mrb[78].mxu1 %vm2285_vm6, %v2232_v22  ;;  %v2234_v28 = vmax.f32 %v1992_v23, 0.0 }
 0x2c1   : > { %v2233_v26 = vmax.f32 %v1987_v25, 0.0  ;;  %v3780_v27 = vpop.f32.mrb[84].mxu0 }
 0x2c2   : > { %v2002_v29 = vadd.f32 %v3780_v27, %v4496_v31  ;;  %v1996_v30 = vpop.f32.mrb[85].mxu0 }
 0x2c3   : > { %v1997_v32 = vadd.f32 %v4496_v31, %v1996_v30  ;;  %3875 = vmatprep.mubr.msk.f32.mxu1 %vm2285_vm6, %v2233_v26 }
 0x2c4   : > { %3876 = vmatmul.mubr.msk.f32.gmra.mrb[80].mxu1 %vm2285_vm6, %v2234_v28  ;;  %v2236_v18 = vmax.f32 %v2002_v29, 0.0 }
 0x2c5   : > { %v2235_v33 = vmax.f32 %v1997_v32, 0.0  ;;  %v3783_v34 = vpop.f32.mrb[86].mxu0 }
 0x2c6   : > { %v2012_v35 = vadd.f32 %v3783_v34, %v4496_v31  ;;  %v2006_v36 = vpop.f32.mrb[87].mxu0 }
 0x2c7   : > { %v2007_v37 = vadd.f32 %v4496_v31, %v2006_v36  ;;  %3878 = vmatprep.mubr.msk.f32.mxu1 %vm2285_vm6, %v2235_v33 }
 0x2c8   : > { %3879 = vmatmul.mubr.msk.f32.gmra.mrb[82].mxu1 %vm2285_vm6, %v2236_v18  ;;  %v2238_v40 = vmax.f32 %v2012_v35, 0.0 }
 0x2c9   : > { %v2237_v38 = vmax.f32 %v2007_v37, 0.0  ;;  %v3786_v39 = vpop.f32.mrb[88].mxu0 }
 0x2ca   : > { %v2022_v41 = vadd.f32 %v3786_v39, %v4496_v31  ;;  %v2016_v42 = vpop.f32.mrb[89].mxu0 }
 0x2cb   : > { %v2017_v43 = vadd.f32 %v4496_v31, %v2016_v42  ;;  %3881 = vmatprep.mubr.msk.f32.mxu1 %vm2285_vm6, %v2237_v38 }
 0x2cc   : > { %3882 = vmatmul.mubr.msk.f32.gmra.mrb[84].mxu1 %vm2285_vm6, %v2238_v40  ;;  %v2240_v46 = vmax.f32 %v2022_v41, 0.0 }
 0x2cd   : > { %v2239_v44 = vmax.f32 %v2017_v43, 0.0  ;;  %v3789_v45 = vpop.f32.mrb[90].mxu0 }
 0x2ce   : > { %v2032_v47 = vadd.f32 %v3789_v45, %v4496_v31  ;;  %v2026_v48 = vpop.f32.mrb[91].mxu0 }
 0x2cf   : > { %v2027_v49 = vadd.f32 %v4496_v31, %v2026_v48  ;;  %3884 = vmatprep.mubr.msk.f32.mxu1 %vm2285_vm6, %v2239_v44 }
 0x2d0   : > { %3885 = vmatmul.mubr.msk.f32.gmra.mrb[86].mxu1 %vm2285_vm6, %v2240_v46  ;;  %v2242_v52 = vmax.f32 %v2032_v47, 0.0 }
 0x2d1   : > { %v2241_v50 = vmax.f32 %v2027_v49, 0.0  ;;  %v3792_v51 = vpop.f32.mrb[92].mxu0 }
 0x2d2   : > { %v2042_v53 = vadd.f32 %v3792_v51, %v4496_v31  ;;  %v2036_v54 = vpop.f32.mrb[93].mxu0 }
 0x2d3   : > { %v2037_v55 = vadd.f32 %v4496_v31, %v2036_v54  ;;  %3887 = vmatprep.mubr.msk.f32.mxu1 %vm2285_vm6, %v2241_v50 }
 0x2d4   : > { %3888 = vmatmul.mubr.msk.f32.gmra.mrb[88].mxu1 %vm2285_vm6, %v2242_v52  ;;  %v2244_v58 = vmax.f32 %v2042_v53, 0.0 }
 0x2d5   : > { %v2243_v56 = vmax.f32 %v2037_v55, 0.0  ;;  %v3795_v57 = vpop.f32.mrb[94].mxu0 }
 0x2d6   : > { %v2052_v59 = vadd.f32 %v3795_v57, %v4496_v31  ;;  %v2046_v60 = vpop.f32.mrb[95].mxu0 }
 0x2d7   : > { %v2047_v61 = vadd.f32 %v4496_v31, %v2046_v60  ;;  %3890 = vmatprep.mubr.msk.f32.mxu1 %vm2285_vm6, %v2243_v56 }
 0x2d8   : > { %3891 = vmatmul.mubr.msk.f32.gmra.mrb[90].mxu1 %vm2285_vm6, %v2244_v58  ;;  %v2246_v0 = vmax.f32 %v2052_v59, 0.0 }
 0x2d9   : > { %v2245_v62 = vmax.f32 %v2047_v61, 0.0  ;;  %v3798_v63 = vpop.f32.mrb[96].mxu0 }
 0x2da   : > { %v2062_v1 = vadd.f32 %v3798_v63, %v4496_v31  ;;  %v2056_v2 = vpop.f32.mrb[97].mxu0 }
 0x2db   : > { %v2057_v3 = vadd.f32 %v4496_v31, %v2056_v2  ;;  %3893 = vmatprep.mubr.msk.f32.mxu1 %vm2285_vm6, %v2245_v62 }
 0x2dc   : > { %3894 = vmatmul.mubr.msk.f32.gmra.mrb[92].mxu1 %vm2285_vm6, %v2246_v0  ;;  %v2248_v6 = vmax.f32 %v2062_v1, 0.0 }
 0x2dd   : > { %v2247_v4 = vmax.f32 %v2057_v3, 0.0  ;;  %v3801_v5 = vpop.f32.mrb[98].mxu0 }
 0x2de   : > { %v2072_v7 = vadd.f32 %v3801_v5, %v4496_v31  ;;  %v2066_v8 = vpop.f32.mrb[99].mxu0 }
 0x2df   : > { %v2067_v9 = vadd.f32 %v4496_v31, %v2066_v8  ;;  %3896 = vmatprep.mubr.msk.f32.mxu1 %vm2285_vm6, %v2247_v4 }
 0x2e0   : > { %3897 = vmatmul.mubr.msk.f32.gmra.mrb[94].mxu1 %vm2285_vm6, %v2248_v6  ;;  %v2250_v12 = vmax.f32 %v2072_v7, 0.0 }
 0x2e1   : > { %v2249_v10 = vmax.f32 %v2067_v9, 0.0  ;;  %v3804_v11 = vpop.f32.mrb[100].mxu0 }
 0x2e2   : > { %v2082_v13 = vadd.f32 %v3804_v11, %v4496_v31  ;;  %v2076_v14 = vpop.f32.mrb[101].mxu0 }
 0x2e3   : > { %v2077_v15 = vadd.f32 %v4496_v31, %v2076_v14  ;;  %3899 = vmatprep.mubr.msk.f32.mxu1 %vm2285_vm6, %v2249_v10 }
 0x2e4   : > { %3900 = vmatmul.mubr.msk.f32.gmra.mrb[96].mxu1 %vm2285_vm6, %v2250_v12  ;;  %v2252_v19 = vmax.f32 %v2082_v13, 0.0 }
 0x2e5   : > { %v2251_v16 = vmax.f32 %v2077_v15, 0.0  ;;  %v3807_v17 = vpop.f32.mrb[102].mxu0 }
 0x2e6   : > { %v2092_v20 = vadd.f32 %v3807_v17, %v4496_v31  ;;  %v2086_v21 = vpop.f32.mrb[103].mxu0 }
 0x2e7   : > { %v2087_v22 = vadd.f32 %v4496_v31, %v2086_v21  ;;  %3902 = vmatprep.mubr.msk.f32.mxu1 %vm2285_vm6, %v2251_v16 }
 0x2e8   : > { %3903 = vmatmul.mubr.msk.f32.gmra.mrb[98].mxu1 %vm2285_vm6, %v2252_v19  ;;  %v2254_v25 = vmax.f32 %v2092_v20, 0.0 }
 0x2e9   : > { %v2253_v23 = vmax.f32 %v2087_v22, 0.0  ;;  %v3810_v24 = vpop.f32.mrb[104].mxu0 }
 0x2ea   : > { %v2102_v26 = vadd.f32 %v3810_v24, %v4496_v31  ;;  %v2096_v27 = vpop.f32.mrb[105].mxu0 }
 0x2eb   : > { %v2097_v28 = vadd.f32 %v4496_v31, %v2096_v27  ;;  %3905 = vmatprep.mubr.msk.f32.mxu1 %vm2285_vm6, %v2253_v23 }
 0x2ec   : > { %3906 = vmatmul.mubr.msk.f32.gmra.mrb[100].mxu1 %vm2285_vm6, %v2254_v25  ;;  %v2256_v32 = vmax.f32 %v2102_v26, 0.0 }
 0x2ed   : > { %v2255_v29 = vmax.f32 %v2097_v28, 0.0  ;;  %v3813_v30 = vpop.f32.mrb[106].mxu0 }
 0x2ee   : > { %v2112_v33 = vadd.f32 %v3813_v30, %v4496_v31  ;;  %v2106_v34 = vpop.f32.mrb[107].mxu0 }
 0x2ef   : > { %v2107_v18 = vadd.f32 %v4496_v31, %v2106_v34  ;;  %3908 = vmatprep.mubr.msk.f32.mxu1 %vm2285_vm6, %v2255_v29 }
 0x2f0   : > { %3909 = vmatmul.mubr.msk.f32.gmra.mrb[102].mxu1 %vm2285_vm6, %v2256_v32  ;;  %v2258_v37 = vmax.f32 %v2112_v33, 0.0 }
 0x2f1   : > { %v2257_v35 = vmax.f32 %v2107_v18, 0.0  ;;  %v3816_v36 = vpop.f32.mrb[108].mxu0  ;;  %v4629_v18 = vld [vmem:[%s4838_s5 + $0x3] ss:$0 sm:$0xff] }
 0x2f2   : > { %v2122_v38 = vadd.f32 %v3816_v36, %v4496_v31  ;;  %v2116_v39 = vpop.f32.mrb[109].mxu0 }
 0x2f3   : > { %v2117_v40 = vadd.f32 %v4496_v31, %v2116_v39  ;;  %3911 = vmatprep.mubr.msk.f32.mxu1 %vm2285_vm6, %v2257_v35 }
 0x2f4   : > { %3912 = vmatmul.mubr.msk.f32.gmra.mrb[104].mxu1 %vm2285_vm6, %v2258_v37  ;;  %v2260_v43 = vmax.f32 %v2122_v38, 0.0 }
 0x2f5   : > { %v2259_v41 = vmax.f32 %v2117_v40, 0.0  ;;  %v3819_v42 = vpop.f32.mrb[110].mxu0 }
 0x2f6   : > { %v2132_v44 = vadd.f32 %v3819_v42, %v4496_v31  ;;  %v2126_v45 = vpop.f32.mrb[111].mxu0 }
 0x2f7   : > { %v2127_v46 = vadd.f32 %v4496_v31, %v2126_v45  ;;  %3914 = vmatprep.mubr.msk.f32.mxu1 %vm2285_vm6, %v2259_v41 }
 0x2f8   : > { %3915 = vmatmul.mubr.msk.f32.gmra.mrb[106].mxu1 %vm2285_vm6, %v2260_v43  ;;  %v2262_v49 = vmax.f32 %v2132_v44, 0.0 }
 0x2f9   : > { %v2261_v47 = vmax.f32 %v2127_v46, 0.0  ;;  %v3822_v48 = vpop.f32.mrb[112].mxu0 }
 0x2fa   : > { %v2142_v50 = vadd.f32 %v3822_v48, %v4496_v31  ;;  %v2136_v51 = vpop.f32.mrb[113].mxu0 }
 0x2fb   : > { %v2137_v52 = vadd.f32 %v4496_v31, %v2136_v51  ;;  %3917 = vmatprep.mubr.msk.f32.mxu1 %vm2285_vm6, %v2261_v47 }
 0x2fc   : > { %3918 = vmatmul.mubr.msk.f32.gmra.mrb[108].mxu1 %vm2285_vm6, %v2262_v49  ;;  %v2264_v55 = vmax.f32 %v2142_v50, 0.0 }
 0x2fd   : > { %v2263_v53 = vmax.f32 %v2137_v52, 0.0  ;;  %v3825_v54 = vpop.f32.mrb[114].mxu0 }
 0x2fe   : > { %v2152_v56 = vadd.f32 %v3825_v54, %v4496_v31  ;;  %v2146_v57 = vpop.f32.mrb[115].mxu0 }
 0x2ff   : > { %v2147_v58 = vadd.f32 %v4496_v31, %v2146_v57  ;;  %3920 = vmatprep.mubr.msk.f32.mxu1 %vm2285_vm6, %v2263_v53 }
 0x300   : > { %3921 = vmatmul.mubr.msk.f32.gmra.mrb[110].mxu1 %vm2285_vm6, %v2264_v55  ;;  %v2266_v61 = vmax.f32 %v2152_v56, 0.0 }
 0x301   : > { %v2265_v59 = vmax.f32 %v2147_v58, 0.0  ;;  %v3828_v60 = vpop.f32.mrb[116].mxu0 }
 0x302   : > { %v2162_v62 = vadd.f32 %v3828_v60, %v4496_v31  ;;  %v2156_v63 = vpop.f32.mrb[117].mxu0 }
 0x303   : > { %v2157_v0 = vadd.f32 %v4496_v31, %v2156_v63  ;;  %3923 = vmatprep.mubr.msk.f32.mxu1 %vm2285_vm6, %v2265_v59 }
 0x304   : > { %3924 = vmatmul.mubr.msk.f32.gmra.mrb[112].mxu1 %vm2285_vm6, %v2266_v61  ;;  %v2268_v3 = vmax.f32 %v2162_v62, 0.0 }
 0x305   : > { %v2267_v1 = vmax.f32 %v2157_v0, 0.0  ;;  %v3831_v2 = vpop.f32.mrb[118].mxu0 }
 0x306   : > { %v2172_v4 = vadd.f32 %v3831_v2, %v4496_v31  ;;  %v2166_v5 = vpop.f32.mrb[119].mxu0 }
 0x307   : > { %v2167_v6 = vadd.f32 %v4496_v31, %v2166_v5  ;;  %3926 = vmatprep.mubr.msk.f32.mxu1 %vm2285_vm6, %v2267_v1 }
 0x308   : > { %3927 = vmatmul.mubr.msk.f32.gmra.mrb[114].mxu1 %vm2285_vm6, %v2268_v3  ;;  %v2270_v9 = vmax.f32 %v2172_v4, 0.0 }
 0x309   : > { %v2269_v7 = vmax.f32 %v2167_v6, 0.0  ;;  %v3834_v8 = vpop.f32.mrb[120].mxu0 }
 0x30a   : > { %v2182_v10 = vadd.f32 %v3834_v8, %v4496_v31  ;;  %v2176_v11 = vpop.f32.mrb[121].mxu0 }
 0x30b   : > { %v2177_v12 = vadd.f32 %v4496_v31, %v2176_v11  ;;  %3929 = vmatprep.mubr.msk.f32.mxu1 %vm2285_vm6, %v2269_v7 }
 0x30c   : > { %3930 = vmatmul.mubr.msk.f32.gmra.mrb[116].mxu1 %vm2285_vm6, %v2270_v9  ;;  %v2272_v15 = vmax.f32 %v2182_v10, 0.0 }
 0x30d   : > { %v2271_v13 = vmax.f32 %v2177_v12, 0.0  ;;  %v3837_v14 = vpop.f32.mrb[122].mxu0 }
 0x30e   : > { %v2192_v16 = vadd.f32 %v3837_v14, %v4496_v31  ;;  %v2186_v17 = vpop.f32.mrb[123].mxu0 }
 0x30f   : > { %v2187_v19 = vadd.f32 %v4496_v31, %v2186_v17  ;;  %3932 = vmatprep.mubr.msk.f32.mxu1 %vm2285_vm6, %v2271_v13 }
 0x310   : > { %3933 = vmatmul.mubr.msk.f32.gmra.mrb[118].mxu1 %vm2285_vm6, %v2272_v15  ;;  %v2274_v22 = vmax.f32 %v2192_v16, 0.0 }
 0x311   : > { %v2273_v20 = vmax.f32 %v2187_v19, 0.0  ;;  %v3840_v21 = vpop.f32.mrb[124].mxu0 }
 0x312   : > { %v2202_v23 = vadd.f32 %v3840_v21, %v4496_v31  ;;  %v2196_v24 = vpop.f32.mrb[125].mxu0 }
 0x313   : > { %v2197_v25 = vadd.f32 %v4496_v31, %v2196_v24  ;;  %3935 = vmatprep.mubr.msk.f32.mxu1 %vm2285_vm6, %v2273_v20 }
 0x314   : > { %3936 = vmatmul.mubr.msk.f32.gmra.mrb[120].mxu1 %vm2285_vm6, %v2274_v22  ;;  %v2276_v28 = vmax.f32 %v2202_v23, 0.0 }
 0x315   : > { %v2275_v26 = vmax.f32 %v2197_v25, 0.0  ;;  %v3843_v27 = vpop.f32.mrb[126].mxu0 }
 0x316   : > { %v2212_v29 = vadd.f32 %v3843_v27, %v4496_v31  ;;  %v2206_v30 = vpop.f32.mrb[127].mxu0 }
 0x317   : > { %v2207_v32 = vadd.f32 %v4496_v31, %v2206_v30  ;;  %3938 = vmatprep.mubr.msk.f32.mxu1 %vm2285_vm6, %v2275_v26 }
 0x318   : > { %3939 = vmatmul.mubr.msk.f32.gmra.mrb[122].mxu1 %vm2285_vm6, %v2276_v28  ;;  %v2278_v34 = vmax.f32 %v2212_v29, 0.0 }
 0x319   : > { %v2277_v33 = vmax.f32 %v2207_v32, 0.0 }
 0x31b   : > { %3941 = vmatprep.mubr.msk.f32.mxu1 %vm2285_vm6, %v2277_v33 }
 0x31c   : > { %3942 = vmatmul.mubr.msk.f32.gmra.mrb[124].mxu1 %vm2285_vm6, %v2278_v34 }
 0x373   : > { %v3850_v31 = vpop.f32.mrb[128].mxu0 }
 0x374   : > { %v2550_v35 = vadd.f32 %v3850_v31, %v4629_v18  ;;  %v2544_v36 = vpop.f32.mrb[129].mxu0 }
 0x375   : > { %v2545_v37 = vadd.f32 %v4629_v18, %v2544_v36 }
 0x376   : > { %2865 = vst.msk [vmem:[%s4636_s26 + $0x8] sm:$0xff] %vm2863_vm7, %v2550_v35 }
 0x377   : > { %2864 = vst.msk [vmem:[%s4636_s26] sm:$0xff] %vm2863_vm7, %v2545_v37  ;;  %v3853_v38 = vpop.f32.mrb[64].mxu1 }
 0x378   : > { %v2560_v39 = vadd.f32 %v3853_v38, %v4629_v18  ;;  %v2554_v40 = vpop.f32.mrb[65].mxu1 }
 0x379   : > { %v2555_v41 = vadd.f32 %v4629_v18, %v2554_v40 }
 0x37a   : > { %2867 = vst.msk [vmem:[%s4636_s26 + $0x18] sm:$0xff] %vm2863_vm7, %v2560_v39 }
 0x37b   : > { %2866 = vst.msk [vmem:[%s4636_s26 + $0x10] sm:$0xff] %vm2863_vm7, %v2555_v41  ;;  %v3856_v42 = vpop.f32.mrb[66].mxu1 }
 0x37c   : > { %v2570_v43 = vadd.f32 %v3856_v42, %v4629_v18  ;;  %v2564_v44 = vpop.f32.mrb[67].mxu1 }
 0x37d   : > { %v2565_v45 = vadd.f32 %v4629_v18, %v2564_v44 }
 0x37e   : > { %2869 = vst.msk [vmem:[%s4636_s26 + $0x28] sm:$0xff] %vm2863_vm7, %v2570_v43 }
 0x37f   : > { %2868 = vst.msk [vmem:[%s4636_s26 + $0x20] sm:$0xff] %vm2863_vm7, %v2565_v45  ;;  %v3859_v46 = vpop.f32.mrb[68].mxu1 }
 0x380   : > { %v2580_v47 = vadd.f32 %v3859_v46, %v4629_v18  ;;  %v2574_v48 = vpop.f32.mrb[69].mxu1 }
 0x381   : > { %v2575_v49 = vadd.f32 %v4629_v18, %v2574_v48 }
 0x382   : > { %2871 = vst.msk [vmem:[%s4636_s26 + $0x38] sm:$0xff] %vm2863_vm7, %v2580_v47 }
 0x383   : > { %2870 = vst.msk [vmem:[%s4636_s26 + $0x30] sm:$0xff] %vm2863_vm7, %v2575_v49  ;;  %v3862_v50 = vpop.f32.mrb[70].mxu1 }
 0x384   : > { %v2590_v51 = vadd.f32 %v3862_v50, %v4629_v18  ;;  %v2584_v52 = vpop.f32.mrb[71].mxu1 }
 0x385   : > { %v2585_v53 = vadd.f32 %v4629_v18, %v2584_v52 }
 0x386   : > { %2873 = vst.msk [vmem:[%s4636_s26 + $0x48] sm:$0xff] %vm2863_vm7, %v2590_v51 }
 0x387   : > { %2872 = vst.msk [vmem:[%s4636_s26 + $0x40] sm:$0xff] %vm2863_vm7, %v2585_v53  ;;  %v3865_v54 = vpop.f32.mrb[72].mxu1 }
 0x388   : > { %v2600_v55 = vadd.f32 %v3865_v54, %v4629_v18  ;;  %v2594_v56 = vpop.f32.mrb[73].mxu1 }
 0x389   : > { %v2595_v57 = vadd.f32 %v4629_v18, %v2594_v56 }
 0x38a   : > { %2875 = vst.msk [vmem:[%s4636_s26 + $0x58] sm:$0xff] %vm2863_vm7, %v2600_v55 }
 0x38b   : > { %2874 = vst.msk [vmem:[%s4636_s26 + $0x50] sm:$0xff] %vm2863_vm7, %v2595_v57  ;;  %v3868_v58 = vpop.f32.mrb[74].mxu1 }
 0x38c   : > { %v2610_v59 = vadd.f32 %v3868_v58, %v4629_v18  ;;  %v2604_v60 = vpop.f32.mrb[75].mxu1 }
 0x38d   : > { %v2605_v61 = vadd.f32 %v4629_v18, %v2604_v60 }
 0x38e   : > { %2877 = vst.msk [vmem:[%s4636_s26 + $0x68] sm:$0xff] %vm2863_vm7, %v2610_v59 }
 0x38f   : > { %2876 = vst.msk [vmem:[%s4636_s26 + $0x60] sm:$0xff] %vm2863_vm7, %v2605_v61  ;;  %v3871_v62 = vpop.f32.mrb[76].mxu1 }
 0x390   : > { %v2620_v63 = vadd.f32 %v3871_v62, %v4629_v18  ;;  %v2614_v0 = vpop.f32.mrb[77].mxu1 }
 0x391   : > { %v2615_v1 = vadd.f32 %v4629_v18, %v2614_v0 }
 0x392   : > { %2879 = vst.msk [vmem:[%s4636_s26 + $0x78] sm:$0xff] %vm2863_vm7, %v2620_v63 }
 0x393   : > { %2878 = vst.msk [vmem:[%s4636_s26 + $0x70] sm:$0xff] %vm2863_vm7, %v2615_v1  ;;  %v3874_v2 = vpop.f32.mrb[78].mxu1 }
 0x394   : > { %v2630_v3 = vadd.f32 %v3874_v2, %v4629_v18  ;;  %v2624_v4 = vpop.f32.mrb[79].mxu1 }
 0x395   : > { %v2625_v5 = vadd.f32 %v4629_v18, %v2624_v4 }
 0x396   : > { %2881 = vst.msk [vmem:[%s4636_s26 + $0x88] sm:$0xff] %vm2863_vm7, %v2630_v3 }
 0x397   : > { %2880 = vst.msk [vmem:[%s4636_s26 + $0x80] sm:$0xff] %vm2863_vm7, %v2625_v5  ;;  %v3877_v6 = vpop.f32.mrb[80].mxu1 }
 0x398   : > { %v2640_v7 = vadd.f32 %v3877_v6, %v4629_v18  ;;  %v2634_v8 = vpop.f32.mrb[81].mxu1 }
 0x399   : > { %v2635_v9 = vadd.f32 %v4629_v18, %v2634_v8 }
 0x39a   : > { %2883 = vst.msk [vmem:[%s4636_s26 + $0x98] sm:$0xff] %vm2863_vm7, %v2640_v7 }
 0x39b   : > { %2882 = vst.msk [vmem:[%s4636_s26 + $0x90] sm:$0xff] %vm2863_vm7, %v2635_v9  ;;  %v3880_v10 = vpop.f32.mrb[82].mxu1 }
 0x39c   : > { %v2650_v11 = vadd.f32 %v3880_v10, %v4629_v18  ;;  %v2644_v12 = vpop.f32.mrb[83].mxu1 }
 0x39d   : > { %v2645_v13 = vadd.f32 %v4629_v18, %v2644_v12 }
 0x39e   : > { %2885 = vst.msk [vmem:[%s4636_s26 + $0xa8] sm:$0xff] %vm2863_vm7, %v2650_v11 }
 0x39f   : > { %2884 = vst.msk [vmem:[%s4636_s26 + $0xa0] sm:$0xff] %vm2863_vm7, %v2645_v13  ;;  %v3883_v14 = vpop.f32.mrb[84].mxu1 }
 0x3a0   : > { %v2660_v15 = vadd.f32 %v3883_v14, %v4629_v18  ;;  %v2654_v16 = vpop.f32.mrb[85].mxu1 }
 0x3a1   : > { %v2655_v17 = vadd.f32 %v4629_v18, %v2654_v16 }
 0x3a2   : > { %2887 = vst.msk [vmem:[%s4636_s26 + $0xb8] sm:$0xff] %vm2863_vm7, %v2660_v15 }
 0x3a3   : > { %2886 = vst.msk [vmem:[%s4636_s26 + $0xb0] sm:$0xff] %vm2863_vm7, %v2655_v17  ;;  %v3886_v19 = vpop.f32.mrb[86].mxu1 }
 0x3a4   : > { %v2670_v20 = vadd.f32 %v3886_v19, %v4629_v18  ;;  %v2664_v21 = vpop.f32.mrb[87].mxu1 }
 0x3a5   : > { %v2665_v22 = vadd.f32 %v4629_v18, %v2664_v21 }
 0x3a6   : > { %2889 = vst.msk [vmem:[%s4636_s26 + $0xc8] sm:$0xff] %vm2863_vm7, %v2670_v20 }
 0x3a7   : > { %2888 = vst.msk [vmem:[%s4636_s26 + $0xc0] sm:$0xff] %vm2863_vm7, %v2665_v22  ;;  %v3889_v23 = vpop.f32.mrb[88].mxu1 }
 0x3a8   : > { %v2680_v24 = vadd.f32 %v3889_v23, %v4629_v18  ;;  %v2674_v25 = vpop.f32.mrb[89].mxu1 }
 0x3a9   : > { %v2675_v26 = vadd.f32 %v4629_v18, %v2674_v25 }
 0x3aa   : > { %2891 = vst.msk [vmem:[%s4636_s26 + $0xd8] sm:$0xff] %vm2863_vm7, %v2680_v24 }
 0x3ab   : > { %2890 = vst.msk [vmem:[%s4636_s26 + $0xd0] sm:$0xff] %vm2863_vm7, %v2675_v26  ;;  %v3892_v27 = vpop.f32.mrb[90].mxu1 }
 0x3ac   : > { %v2690_v28 = vadd.f32 %v3892_v27, %v4629_v18  ;;  %v2684_v29 = vpop.f32.mrb[91].mxu1 }
 0x3ad   : > { %v2685_v30 = vadd.f32 %v4629_v18, %v2684_v29 }
 0x3ae   : > { %2893 = vst.msk [vmem:[%s4636_s26 + $0xe8] sm:$0xff] %vm2863_vm7, %v2690_v28 }
 0x3af   : > { %2892 = vst.msk [vmem:[%s4636_s26 + $0xe0] sm:$0xff] %vm2863_vm7, %v2685_v30  ;;  %v3895_v32 = vpop.f32.mrb[92].mxu1 }
 0x3b0   : > { %v2700_v33 = vadd.f32 %v3895_v32, %v4629_v18  ;;  %v2694_v34 = vpop.f32.mrb[93].mxu1 }
 0x3b1   : > { %v2695_v31 = vadd.f32 %v4629_v18, %v2694_v34 }
 0x3b2   : > { %2895 = vst.msk [vmem:[%s4636_s26 + $0xf8] sm:$0xff] %vm2863_vm7, %v2700_v33 }
 0x3b3   : > { %2894 = vst.msk [vmem:[%s4636_s26 + $0xf0] sm:$0xff] %vm2863_vm7, %v2695_v31  ;;  %v3898_v35 = vpop.f32.mrb[94].mxu1 }
 0x3b4   : > { %v2710_v36 = vadd.f32 %v3898_v35, %v4629_v18  ;;  %v2704_v37 = vpop.f32.mrb[95].mxu1 }
 0x3b5   : > { %v2705_v38 = vadd.f32 %v4629_v18, %v2704_v37 }
 0x3b6   : > { %2897 = vst.msk [vmem:[%s4636_s26 + $0x108] sm:$0xff] %vm2863_vm7, %v2710_v36 }
 0x3b7   : > { %2896 = vst.msk [vmem:[%s4636_s26 + $0x100] sm:$0xff] %vm2863_vm7, %v2705_v38  ;;  %v3901_v39 = vpop.f32.mrb[96].mxu1 }
 0x3b8   : > { %v2720_v40 = vadd.f32 %v3901_v39, %v4629_v18  ;;  %v2714_v41 = vpop.f32.mrb[97].mxu1 }
 0x3b9   : > { %v2715_v42 = vadd.f32 %v4629_v18, %v2714_v41 }
 0x3ba   : > { %2899 = vst.msk [vmem:[%s4636_s26 + $0x118] sm:$0xff] %vm2863_vm7, %v2720_v40 }
 0x3bb   : > { %2898 = vst.msk [vmem:[%s4636_s26 + $0x110] sm:$0xff] %vm2863_vm7, %v2715_v42  ;;  %v3904_v43 = vpop.f32.mrb[98].mxu1 }
 0x3bc   : > { %v2730_v44 = vadd.f32 %v3904_v43, %v4629_v18  ;;  %v2724_v45 = vpop.f32.mrb[99].mxu1 }
 0x3bd   : > { %v2725_v46 = vadd.f32 %v4629_v18, %v2724_v45 }
 0x3be   : > { %2901 = vst.msk [vmem:[%s4636_s26 + $0x128] sm:$0xff] %vm2863_vm7, %v2730_v44 }
 0x3bf   : > { %2900 = vst.msk [vmem:[%s4636_s26 + $0x120] sm:$0xff] %vm2863_vm7, %v2725_v46  ;;  %v3907_v47 = vpop.f32.mrb[100].mxu1 }
 0x3c0   : > { %v2740_v48 = vadd.f32 %v3907_v47, %v4629_v18  ;;  %v2734_v49 = vpop.f32.mrb[101].mxu1 }
 0x3c1   : > { %v2735_v50 = vadd.f32 %v4629_v18, %v2734_v49 }
 0x3c2   : > { %2903 = vst.msk [vmem:[%s4636_s26 + $0x138] sm:$0xff] %vm2863_vm7, %v2740_v48 }
 0x3c3   : > { %2902 = vst.msk [vmem:[%s4636_s26 + $0x130] sm:$0xff] %vm2863_vm7, %v2735_v50  ;;  %v3910_v51 = vpop.f32.mrb[102].mxu1 }
 0x3c4   : > { %v2750_v52 = vadd.f32 %v3910_v51, %v4629_v18  ;;  %v2744_v53 = vpop.f32.mrb[103].mxu1 }
 0x3c5   : > { %v2745_v54 = vadd.f32 %v4629_v18, %v2744_v53 }
 0x3c6   : > { %2905 = vst.msk [vmem:[%s4636_s26 + $0x148] sm:$0xff] %vm2863_vm7, %v2750_v52 }
 0x3c7   : > { %2904 = vst.msk [vmem:[%s4636_s26 + $0x140] sm:$0xff] %vm2863_vm7, %v2745_v54  ;;  %v3913_v55 = vpop.f32.mrb[104].mxu1 }
 0x3c8   : > { %v2760_v56 = vadd.f32 %v3913_v55, %v4629_v18  ;;  %v2754_v57 = vpop.f32.mrb[105].mxu1 }
 0x3c9   : > { %v2755_v58 = vadd.f32 %v4629_v18, %v2754_v57 }
 0x3ca   : > { %2907 = vst.msk [vmem:[%s4636_s26 + $0x158] sm:$0xff] %vm2863_vm7, %v2760_v56 }
 0x3cb   : > { %2906 = vst.msk [vmem:[%s4636_s26 + $0x150] sm:$0xff] %vm2863_vm7, %v2755_v58  ;;  %v3916_v59 = vpop.f32.mrb[106].mxu1 }
 0x3cc   : > { %v2770_v60 = vadd.f32 %v3916_v59, %v4629_v18  ;;  %v2764_v61 = vpop.f32.mrb[107].mxu1 }
 0x3cd   : > { %v2765_v62 = vadd.f32 %v4629_v18, %v2764_v61 }
 0x3ce   : > { %2909 = vst.msk [vmem:[%s4636_s26 + $0x168] sm:$0xff] %vm2863_vm7, %v2770_v60 }
 0x3cf   : > { %2908 = vst.msk [vmem:[%s4636_s26 + $0x160] sm:$0xff] %vm2863_vm7, %v2765_v62  ;;  %v3919_v63 = vpop.f32.mrb[108].mxu1 }
 0x3d0   : > { %v2780_v0 = vadd.f32 %v3919_v63, %v4629_v18  ;;  %v2774_v1 = vpop.f32.mrb[109].mxu1 }
 0x3d1   : > { %v2775_v2 = vadd.f32 %v4629_v18, %v2774_v1 }
 0x3d2   : > { %2911 = vst.msk [vmem:[%s4636_s26 + $0x178] sm:$0xff] %vm2863_vm7, %v2780_v0 }
 0x3d3   : > { %2910 = vst.msk [vmem:[%s4636_s26 + $0x170] sm:$0xff] %vm2863_vm7, %v2775_v2  ;;  %v3922_v3 = vpop.f32.mrb[110].mxu1 }
 0x3d4   : > { %v2790_v4 = vadd.f32 %v3922_v3, %v4629_v18  ;;  %v2784_v5 = vpop.f32.mrb[111].mxu1 }
 0x3d5   : > { %v2785_v6 = vadd.f32 %v4629_v18, %v2784_v5 }
 0x3d6   : > { %2913 = vst.msk [vmem:[%s4636_s26 + $0x188] sm:$0xff] %vm2863_vm7, %v2790_v4 }
 0x3d7   : > { %2912 = vst.msk [vmem:[%s4636_s26 + $0x180] sm:$0xff] %vm2863_vm7, %v2785_v6  ;;  %v3925_v7 = vpop.f32.mrb[112].mxu1 }
 0x3d8   : > { %v2800_v8 = vadd.f32 %v3925_v7, %v4629_v18  ;;  %v2794_v9 = vpop.f32.mrb[113].mxu1 }
 0x3d9   : > { %v2795_v10 = vadd.f32 %v4629_v18, %v2794_v9 }
 0x3da   : > { %2915 = vst.msk [vmem:[%s4636_s26 + $0x198] sm:$0xff] %vm2863_vm7, %v2800_v8 }
 0x3db   : > { %2914 = vst.msk [vmem:[%s4636_s26 + $0x190] sm:$0xff] %vm2863_vm7, %v2795_v10  ;;  %v3928_v11 = vpop.f32.mrb[114].mxu1 }
 0x3dc   : > { %v2810_v12 = vadd.f32 %v3928_v11, %v4629_v18  ;;  %v2804_v13 = vpop.f32.mrb[115].mxu1 }
 0x3dd   : > { %v2805_v14 = vadd.f32 %v4629_v18, %v2804_v13 }
 0x3de   : > { %2917 = vst.msk [vmem:[%s4636_s26 + $0x1a8] sm:$0xff] %vm2863_vm7, %v2810_v12 }
 0x3df   : > { %2916 = vst.msk [vmem:[%s4636_s26 + $0x1a0] sm:$0xff] %vm2863_vm7, %v2805_v14  ;;  %v3931_v15 = vpop.f32.mrb[116].mxu1 }
 0x3e0   : > { %v2820_v16 = vadd.f32 %v3931_v15, %v4629_v18  ;;  %v2814_v17 = vpop.f32.mrb[117].mxu1 }
 0x3e1   : > { %v2815_v19 = vadd.f32 %v4629_v18, %v2814_v17 }
 0x3e2   : > { %2919 = vst.msk [vmem:[%s4636_s26 + $0x1b8] sm:$0xff] %vm2863_vm7, %v2820_v16 }
 0x3e3   : > { %2918 = vst.msk [vmem:[%s4636_s26 + $0x1b0] sm:$0xff] %vm2863_vm7, %v2815_v19  ;;  %v3934_v20 = vpop.f32.mrb[118].mxu1 }
 0x3e4   : > { %v2830_v21 = vadd.f32 %v3934_v20, %v4629_v18  ;;  %v2824_v22 = vpop.f32.mrb[119].mxu1 }
 0x3e5   : > { %v2825_v23 = vadd.f32 %v4629_v18, %v2824_v22 }
 0x3e6   : > { %2921 = vst.msk [vmem:[%s4636_s26 + $0x1c8] sm:$0xff] %vm2863_vm7, %v2830_v21 }
 0x3e7   : > { %2920 = vst.msk [vmem:[%s4636_s26 + $0x1c0] sm:$0xff] %vm2863_vm7, %v2825_v23  ;;  %v3937_v24 = vpop.f32.mrb[120].mxu1 }
 0x3e8   : > { %v2840_v25 = vadd.f32 %v3937_v24, %v4629_v18  ;;  %v2834_v26 = vpop.f32.mrb[121].mxu1 }
 0x3e9   : > { %v2835_v27 = vadd.f32 %v4629_v18, %v2834_v26 }
 0x3ea   : > { %2923 = vst.msk [vmem:[%s4636_s26 + $0x1d8] sm:$0xff] %vm2863_vm7, %v2840_v25 }
 0x3eb   : > { %2922 = vst.msk [vmem:[%s4636_s26 + $0x1d0] sm:$0xff] %vm2863_vm7, %v2835_v27  ;;  %v3940_v28 = vpop.f32.mrb[122].mxu1 }
 0x3ec   : > { %v2850_v29 = vadd.f32 %v3940_v28, %v4629_v18  ;;  %v2844_v30 = vpop.f32.mrb[123].mxu1 }
 0x3ed   : > { %v2845_v32 = vadd.f32 %v4629_v18, %v2844_v30 }
 0x3ee   : > { %2925 = vst.msk [vmem:[%s4636_s26 + $0x1e8] sm:$0xff] %vm2863_vm7, %v2850_v29 }
 0x3ef   : > { %2924 = vst.msk [vmem:[%s4636_s26 + $0x1e0] sm:$0xff] %vm2863_vm7, %v2845_v32  ;;  %v3943_v33 = vpop.f32.mrb[124].mxu1 }
 0x3f0   : > { %v2860_v34 = vadd.f32 %v3943_v33, %v4629_v18  ;;  %v2854_v31 = vpop.f32.mrb[125].mxu1 }
 0x3f1   : > { %v2855_v35 = vadd.f32 %v4629_v18, %v2854_v31 }
 0x3f2   : > { %2927 = vst.msk [vmem:[%s4636_s26 + $0x1f8] sm:$0xff] %vm2863_vm7, %v2860_v34 }
 0x3f3   : > { %2926 = vst.msk [vmem:[%s4636_s26 + $0x1f0] sm:$0xff] %vm2863_vm7, %v2855_v35 }
 0x3f4 PF: > { %s16_s21 = sadd.s32 1, %s3995_s21  }
 0x3f5   : > { %p13_p4 = scmp.ge.s32.totalorder %s16_s21, 4  }
 0x3f7   :  { %15 = sbr.rel (!%p13_p4) target bundleno = 1 (0x1), region = 74 }

</bundles_post_ra>
